<compile_context>
chip_gen: v7x
topology: tpu7x:2x2x1
jax: 0.10.0
libtpu: 0.0.40
codegen_flags: <defaults>
</compile_context>

<pallas_src>
import functools

import jax
import jax.numpy as jnp
from jax.experimental import pallas as pl
from jax.experimental.pallas import tpu as pltpu


# --------------------------------------------------------------------------
# Fused ASPP kernel: one program per (image, spatial tile)
# --------------------------------------------------------------------------
def _aspp_kernel(x_ref,                       # (TM, Kpad) im2col slab tile
                 row_ref,                     # (1, Cout)  conv_cat bias + branch5
                 w1_ref, b1_ref,              # (Kpad, Cout), (1, Cout)  1x1 branch
                 w2_ref, b2_ref,              # 3x3 dil 6*rate
                 w3_ref, b3_ref,              # 3x3 dil 12*rate
                 w4_ref, b4_ref,              # 3x3 dil 18*rate
                 c1_ref, c2_ref, c3_ref, c4_ref,   # (Cout, Cout) conv_cat slices
                 o_ref,                       # (TM, Cout)
                 acc_ref):                    # VMEM scratch (TM, Cout) f32
    x = x_ref[...]                            # lane-dense (TM, Kpad)

    # Seed the accumulator with conv_cat bias + hoisted global-pool branch.
    acc_ref[...] = jnp.broadcast_to(row_ref[...].astype(jnp.float32),
                                    acc_ref.shape)

    # Four branches: (im2col-slab @ W) + b -> ReLU -> @ conv_cat slice,
    # accumulated in place (concat-then-1x1 == sum of per-branch matmuls).
    branches = ((w1_ref, b1_ref, c1_ref),
                (w2_ref, b2_ref, c2_ref),
                (w3_ref, b3_ref, c3_ref),
                (w4_ref, b4_ref, c4_ref))
    for w_ref, b_ref, c_ref in branches:
        y = jnp.maximum(
            jnp.dot(x, w_ref[...], preferred_element_type=jnp.float32)
            + b_ref[...], 0.0)
        acc_ref[...] += jnp.dot(y, c_ref[...],
                                preferred_element_type=jnp.float32)

    # Final conv_cat ReLU.
    o_ref[...] = jnp.maximum(acc_ref[...], 0.0).astype(o_ref.dtype)


# --------------------------------------------------------------------------
# Parameter setup (deterministic, synthetic) + eval-mode BN folding
# --------------------------------------------------------------------------
def _fold_bn(w, b, gamma, beta, mean, var, eps=1e-5):
    # Fold eval-mode BatchNorm2d into conv weight (Cout, Cin, kh, kw) & bias.
    scale = gamma * jax.lax.rsqrt(var + eps)
    return w * scale[:, None, None, None], (b - mean) * scale + beta


def _branch_params(key, cin, cout, k):
    ks = jax.random.split(key, 6)

    def nrm(kk, shape, s=0.05):
        return jax.random.normal(kk, shape, jnp.float32) * s

    return {
        "w": nrm(ks[0], (cout, cin, k, k)),
        "b": nrm(ks[1], (cout,)),
        "gamma": 1.0 + nrm(ks[2], (cout,)),
        "beta": nrm(ks[3], (cout,)),
        "mean": nrm(ks[4], (cout,)),
        "var": jnp.abs(1.0 + nrm(ks[5], (cout,))),
    }


def init_params(key, dim_in, dim_out):
    k1, k2, k3, k4, k5, kc = jax.random.split(key, 6)
    return {
        "b1": _branch_params(k1, dim_in, dim_out, 1),        # 1x1
        "b2": _branch_params(k2, dim_in, dim_out, 3),        # 3x3 dil 6
        "b3": _branch_params(k3, dim_in, dim_out, 3),        # 3x3 dil 12
        "b4": _branch_params(k4, dim_in, dim_out, 3),        # 3x3 dil 18
        "b5": _branch_params(k5, dim_in, dim_out, 1),        # global 1x1
        "cat": _branch_params(kc, dim_out * 5, dim_out, 1),  # conv_cat 1x1
    }


# --------------------------------------------------------------------------
# Wrapper-side im2col (lane-dense slab construction)
# --------------------------------------------------------------------------
def _im2col(x_nhwc, d):
    """9-tap dilated im2col: (B,H,W,C) -> (B, H*W, 9*C), tap order (ky,kx,c)."""
    B, H, W, C = x_nhwc.shape
    xp = jnp.pad(x_nhwc, ((0, 0), (d, d), (d, d), (0, 0)))
    cols = [xp[:, ky * d:ky * d + H, kx * d:kx * d + W, :]
            for ky in range(3) for kx in range(3)]
    return jnp.concatenate(cols, axis=-1).reshape(B, H * W, 9 * C)


# --------------------------------------------------------------------------
# Forward pass (mirrors ASPP.forward, eval mode)
# --------------------------------------------------------------------------
def aspp_forward(params, x, rate=1, tm=128):
    B, Cin, H, W = x.shape
    Cout = params["b1"]["w"].shape[0]
    dils = (6 * rate, 12 * rate, 18 * rate)
    HW = H * W
    tm = min(tm, HW)
    assert HW % tm == 0 and tm % 8 == 0, (HW, tm)
    assert Cout % 128 == 0, "keep the output lane-dense (Cout % 128 == 0)"

    def fold(bp):
        return _fold_bn(bp["w"], bp["b"], bp["gamma"], bp["beta"],
                        bp["mean"], bp["var"])

    # ---- lane-dense activation slab: [im2col(d6) | im2col(d12) | im2col(d18)]
    x_nhwc = jnp.transpose(x, (0, 2, 3, 1))                      # (B,H,W,Cin)
    slab = jnp.concatenate([_im2col(x_nhwc, d) for d in dils], axis=-1)
    k_real = 27 * Cin
    kpad = max(128, pl.cdiv(k_real, 128) * 128)
    slab = jnp.pad(slab, ((0, 0), (0, 0), (0, kpad - k_real)))   # (B,HW,Kpad)

    # ---- fold BN once; embed every weight into (Kpad, Cout) matmul layout ---
    def embed(w_kc, off):
        z = jnp.zeros((kpad, Cout), w_kc.dtype)
        return z.at[off:off + w_kc.shape[0], :].set(w_kc)

    w1, b1 = fold(params["b1"])
    # 1x1 branch == center tap (ky=kx=1) of the dilation-6 im2col section.
    w1_e = embed(w1.reshape(Cout, Cin).T, 4 * Cin)

    dil_w, dil_b = [], []
    for i, name in enumerate(("b2", "b3", "b4")):
        w, b = fold(params[name])
        wk = jnp.transpose(w, (2, 3, 1, 0)).reshape(9 * Cin, Cout)  # (ky,kx,c)
        dil_w.append(embed(wk, i * 9 * Cin))
        dil_b.append(b)

    wcat, bcat = fold(params["cat"])
    wcat_t = wcat.reshape(Cout, 5 * Cout).T                       # (5*Cout, Cout)
    cat_slices = [wcat_t[i * Cout:(i + 1) * Cout, :] for i in range(5)]

    # ---- branch5 hoisted: global avg pool -> 1x1 conv -> BN -> ReLU ---------
    # Bilinear resize of a 1x1 map (align_corners=True) is a constant
    # broadcast, so its conv_cat contribution is a per-image row; fold it
    # together with the conv_cat bias and seed the kernel accumulator with it.
    w5, b5 = fold(params["b5"])
    gmean = jnp.mean(x_nhwc, axis=(1, 2))                         # (B, Cin)
    y5 = jnp.maximum(gmean @ w5.reshape(Cout, Cin).T + b5, 0.0)   # (B, Cout)
    row = (y5 @ cat_slices[4] + bcat).reshape(B, 1, Cout)         # (B,1,Cout)

    def vec(b):
        return b.reshape(1, Cout)

    def full(shape):
        n = len(shape)
        return pl.BlockSpec(shape, lambda b, t, _n=n: (0,) * _n)

    out = pl.pallas_call(
        _aspp_kernel,
        out_shape=jax.ShapeDtypeStruct((B, HW, Cout), x.dtype),
        grid_spec=pltpu.PrefetchScalarGridSpec(
            num_scalar_prefetch=0,
            grid=(B, HW // tm),
            in_specs=[
                pl.BlockSpec((None, tm, kpad), lambda b, t: (b, t, 0)),
                pl.BlockSpec((None, 1, Cout), lambda b, t: (b, 0, 0)),
                full((kpad, Cout)), full((1, Cout)),
                full((kpad, Cout)), full((1, Cout)),
                full((kpad, Cout)), full((1, Cout)),
                full((kpad, Cout)), full((1, Cout)),
                full((Cout, Cout)), full((Cout, Cout)),
                full((Cout, Cout)), full((Cout, Cout)),
            ],
            out_specs=pl.BlockSpec((None, tm, Cout), lambda b, t: (b, t, 0)),
            scratch_shapes=[pltpu.VMEM((tm, Cout), jnp.float32)],
        ),
        compiler_params=pltpu.CompilerParams(
            dimension_semantics=("parallel", "parallel"),
            vmem_limit_bytes=32 * 1024 * 1024),
    )(slab, row,
      w1_e, vec(b1),
      dil_w[0], vec(dil_b[0]),
      dil_w[1], vec(dil_b[1]),
      dil_w[2], vec(dil_b[2]),
      cat_slices[0], cat_slices[1], cat_slices[2], cat_slices[3])

    out = out.reshape(B, H, W, Cout)
    return jnp.transpose(out, (0, 3, 1, 2))                       # back to NCHW


# --------------------------------------------------------------------------
# Pure-JAX reference (eval-mode ASPP) for a correctness check
# --------------------------------------------------------------------------
def _ref_aspp(params, x, rate=1):
    def conv_bn_relu(bp, y, dil, pad):
        z = jax.lax.conv_general_dilated(
            y, bp["w"], (1, 1), [(pad, pad), (pad, pad)],
            rhs_dilation=(dil, dil),
            dimension_numbers=("NCHW", "OIHW", "NCHW"))
        z = z + bp["b"][None, :, None, None]
        scale = bp["gamma"] * jax.lax.rsqrt(bp["var"] + 1e-5)
        z = ((z - bp["mean"][None, :, None, None]) * scale[None, :, None, None]
             + bp["beta"][None, :, None, None])
        return jnp.maximum(z, 0.0)

    b1 = conv_bn_relu(params["b1"], x, 1, 0)
    b2 = conv_bn_relu(params["b2"], x, 6 * rate, 6 * rate)
    b3 = conv_bn_relu(params["b3"], x, 12 * rate, 12 * rate)
    b4 = conv_bn_relu(params["b4"], x, 18 * rate, 18 * rate)
    g = jnp.mean(x, axis=(2, 3), keepdims=True)
    g = conv_bn_relu(params["b5"], g, 1, 0)
    g = jnp.broadcast_to(g, b1.shape)
    cat = jnp.concatenate([b1, b2, b3, b4, g], axis=1)
    return conv_bn_relu(params["cat"], cat, 1, 0)


# --------------------------------------------------------------------------
if __name__ == "__main__":
    key = jax.random.PRNGKey(0)
    kx, kp = jax.random.split(key)

    # Small shapes: batch=2, dim_in=4, 16x16 spatial; dim_out=128 keeps every
    # matmul output and the kernel's output block lane-dense.
    B, Cin, H, W = 2, 4, 16, 16
    dim_out = 128

    x = jax.random.normal(kx, (B, Cin, H, W), jnp.float32)
    params = init_params(kp, Cin, dim_out)

    fwd = jax.jit(functools.partial(aspp_forward, rate=1))
    out = fwd(params, x)
    jax.block_until_ready(out)

    assert out.shape == (B, dim_out, H, W), out.shape
    assert out.dtype == jnp.float32
    assert bool(jnp.all(jnp.isfinite(out)))

    ref = _ref_aspp(params, x, rate=1)
    assert bool(jnp.allclose(out, ref, atol=2e-3, rtol=2e-3)), (
        float(jnp.max(jnp.abs(out - ref))))

    print("KERNEL_OK")
</pallas_src>

<mosaic_0001>
module attributes {stable_mosaic.version = 11 : i64} {
  func.func @_aspp_kernel(%arg0: i32, %arg1: i32, %arg2: memref<1x128x128xf32, #tpu.memory_space<vmem>>, %arg3: memref<1x1x128xf32, #tpu.memory_space<vmem>>, %arg4: memref<128x128xf32, #tpu.memory_space<vmem>>, %arg5: memref<1x128xf32, #tpu.memory_space<vmem>>, %arg6: memref<128x128xf32, #tpu.memory_space<vmem>>, %arg7: memref<1x128xf32, #tpu.memory_space<vmem>>, %arg8: memref<128x128xf32, #tpu.memory_space<vmem>>, %arg9: memref<1x128xf32, #tpu.memory_space<vmem>>, %arg10: memref<128x128xf32, #tpu.memory_space<vmem>>, %arg11: memref<1x128xf32, #tpu.memory_space<vmem>>, %arg12: memref<128x128xf32, #tpu.memory_space<vmem>>, %arg13: memref<128x128xf32, #tpu.memory_space<vmem>>, %arg14: memref<128x128xf32, #tpu.memory_space<vmem>>, %arg15: memref<128x128xf32, #tpu.memory_space<vmem>>, %arg16: memref<1x128x128xf32, #tpu.memory_space<vmem>>, %arg17: memref<128x128xf32, #tpu.memory_space<vmem>>) attributes {dimension_semantics = [#tpu.dimension_semantics<parallel>, #tpu.dimension_semantics<parallel>], iteration_bounds = array<i64: 2, 2>, scalar_prefetch = 0 : i64, scratch_operands = 1 : i64, tpu.core_type = #tpu.core_type<tc>, window_params = [{transform_indices = @transform_0, window_bounds = array<i64: 1, 128, 128>}, {transform_indices = @transform_1, window_bounds = array<i64: 1, 1, 128>}, {pipeline_mode = #tpu.pipeline_mode<synchronous>, transform_indices = @transform_2, window_bounds = array<i64: 128, 128>}, {pipeline_mode = #tpu.pipeline_mode<synchronous>, transform_indices = @transform_3, window_bounds = array<i64: 1, 128>}, {pipeline_mode = #tpu.pipeline_mode<synchronous>, transform_indices = @transform_4, window_bounds = array<i64: 128, 128>}, {pipeline_mode = #tpu.pipeline_mode<synchronous>, transform_indices = @transform_5, window_bounds = array<i64: 1, 128>}, {pipeline_mode = #tpu.pipeline_mode<synchronous>, transform_indices = @transform_6, window_bounds = array<i64: 128, 128>}, {pipeline_mode = #tpu.pipeline_mode<synchronous>, transform_indices = @transform_7, window_bounds = array<i64: 1, 128>}, {pipeline_mode = #tpu.pipeline_mode<synchronous>, transform_indices = @transform_8, window_bounds = array<i64: 128, 128>}, {pipeline_mode = #tpu.pipeline_mode<synchronous>, transform_indices = @transform_9, window_bounds = array<i64: 1, 128>}, {pipeline_mode = #tpu.pipeline_mode<synchronous>, transform_indices = @transform_10, window_bounds = array<i64: 128, 128>}, {pipeline_mode = #tpu.pipeline_mode<synchronous>, transform_indices = @transform_11, window_bounds = array<i64: 128, 128>}, {pipeline_mode = #tpu.pipeline_mode<synchronous>, transform_indices = @transform_12, window_bounds = array<i64: 128, 128>}, {pipeline_mode = #tpu.pipeline_mode<synchronous>, transform_indices = @transform_13, window_bounds = array<i64: 128, 128>}, {transform_indices = @transform_14, window_bounds = array<i64: 1, 128, 128>}]} {
    %c0 = arith.constant 0 : index
    %c0_0 = arith.constant 0 : index
    %c0_1 = arith.constant 0 : index
    %0 = vector.load %arg2[%c0, %c0_0, %c0_1] : memref<1x128x128xf32, #tpu.memory_space<vmem>>, vector<1x128x128xf32>
    %1 = vector.shape_cast %0 : vector<1x128x128xf32> to vector<128x128xf32>
    %c0_2 = arith.constant 0 : index
    %c0_3 = arith.constant 0 : index
    %c0_4 = arith.constant 0 : index
    %2 = vector.load %arg3[%c0_2, %c0_3, %c0_4] : memref<1x1x128xf32, #tpu.memory_space<vmem>>, vector<1x1x128xf32>
    %3 = vector.shape_cast %2 : vector<1x1x128xf32> to vector<1x128xf32>
    %4 = vector.shape_cast %3 : vector<1x128xf32> to vector<1x128xf32>
    %5 = vector.broadcast %4 : vector<1x128xf32> to vector<128x128xf32>
    %c0_5 = arith.constant 0 : index
    %c0_6 = arith.constant 0 : index
    %6 = vector.load %arg17[%c0_5, %c0_6] : memref<128x128xf32, #tpu.memory_space<vmem>>, vector<128x128xf32>
    tpu.vector_store %arg17[%c0_5, %c0_6], %5 {strides = array<i32>} : memref<128x128xf32, #tpu.memory_space<vmem>>, vector<128x128xf32>,
    %c0_7 = arith.constant 0 : index
    %c0_8 = arith.constant 0 : index
    %7 = vector.load %arg4[%c0_7, %c0_8] : memref<128x128xf32, #tpu.memory_space<vmem>>, vector<128x128xf32>
    %cst = arith.constant dense<0.000000e+00> : vector<128x128xf32>
    %8 = tpu.matmul %1, %7, %cst {dimension_numbers = #tpu.dot_dimension_numbers<[1], [0], [0], [1], [0, 0, 1, 1], [], []>} : vector<128x128xf32>, vector<128x128xf32>, vector<128x128xf32> -> vector<128x128xf32>
    %c0_9 = arith.constant 0 : index
    %c0_10 = arith.constant 0 : index
    %9 = vector.load %arg5[%c0_9, %c0_10] : memref<1x128xf32, #tpu.memory_space<vmem>>, vector<1x128xf32>
    %10 = vector.broadcast %9 : vector<1x128xf32> to vector<128x128xf32>
    %11 = arith.addf %8, %10 : vector<128x128xf32>
    %cst_11 = arith.constant 0.000000e+00 : f32
    %12 = vector.broadcast %cst_11 : f32 to vector<128x128xf32>
    %13 = arith.maximumf %11, %12 : vector<128x128xf32>
    %c0_12 = arith.constant 0 : index
    %c0_13 = arith.constant 0 : index
    %14 = vector.load %arg17[%c0_12, %c0_13] : memref<128x128xf32, #tpu.memory_space<vmem>>, vector<128x128xf32>
    %c0_14 = arith.constant 0 : index
    %c0_15 = arith.constant 0 : index
    %15 = vector.load %arg12[%c0_14, %c0_15] : memref<128x128xf32, #tpu.memory_space<vmem>>, vector<128x128xf32>
    %cst_16 = arith.constant dense<0.000000e+00> : vector<128x128xf32>
    %16 = tpu.matmul %13, %15, %cst_16 {dimension_numbers = #tpu.dot_dimension_numbers<[1], [0], [0], [1], [0, 0, 1, 1], [], []>} : vector<128x128xf32>, vector<128x128xf32>, vector<128x128xf32> -> vector<128x128xf32>
    %17 = arith.addf %14, %16 : vector<128x128xf32>
    %c0_17 = arith.constant 0 : index
    %c0_18 = arith.constant 0 : index
    %18 = vector.load %arg17[%c0_17, %c0_18] : memref<128x128xf32, #tpu.memory_space<vmem>>, vector<128x128xf32>
    tpu.vector_store %arg17[%c0_17, %c0_18], %17 {strides = array<i32>} : memref<128x128xf32, #tpu.memory_space<vmem>>, vector<128x128xf32>,
    %c0_19 = arith.constant 0 : index
    %c0_20 = arith.constant 0 : index
    %19 = vector.load %arg6[%c0_19, %c0_20] : memref<128x128xf32, #tpu.memory_space<vmem>>, vector<128x128xf32>
    %cst_21 = arith.constant dense<0.000000e+00> : vector<128x128xf32>
    %20 = tpu.matmul %1, %19, %cst_21 {dimension_numbers = #tpu.dot_dimension_numbers<[1], [0], [0], [1], [0, 0, 1, 1], [], []>} : vector<128x128xf32>, vector<128x128xf32>, vector<128x128xf32> -> vector<128x128xf32>
    %c0_22 = arith.constant 0 : index
    %c0_23 = arith.constant 0 : index
    %21 = vector.load %arg7[%c0_22, %c0_23] : memref<1x128xf32, #tpu.memory_space<vmem>>, vector<1x128xf32>
    %22 = vector.broadcast %21 : vector<1x128xf32> to vector<128x128xf32>
    %23 = arith.addf %20, %22 : vector<128x128xf32>
    %cst_24 = arith.constant 0.000000e+00 : f32
    %24 = vector.broadcast %cst_24 : f32 to vector<128x128xf32>
    %25 = arith.maximumf %23, %24 : vector<128x128xf32>
    %c0_25 = arith.constant 0 : index
    %c0_26 = arith.constant 0 : index
    %26 = vector.load %arg17[%c0_25, %c0_26] : memref<128x128xf32, #tpu.memory_space<vmem>>, vector<128x128xf32>
    %c0_27 = arith.constant 0 : index
    %c0_28 = arith.constant 0 : index
    %27 = vector.load %arg13[%c0_27, %c0_28] : memref<128x128xf32, #tpu.memory_space<vmem>>, vector<128x128xf32>
    %cst_29 = arith.constant dense<0.000000e+00> : vector<128x128xf32>
    %28 = tpu.matmul %25, %27, %cst_29 {dimension_numbers = #tpu.dot_dimension_numbers<[1], [0], [0], [1], [0, 0, 1, 1], [], []>} : vector<128x128xf32>, vector<128x128xf32>, vector<128x128xf32> -> vector<128x128xf32>
    %29 = arith.addf %26, %28 : vector<128x128xf32>
    %c0_30 = arith.constant 0 : index
    %c0_31 = arith.constant 0 : index
    %30 = vector.load %arg17[%c0_30, %c0_31] : memref<128x128xf32, #tpu.memory_space<vmem>>, vector<128x128xf32>
    tpu.vector_store %arg17[%c0_30, %c0_31], %29 {strides = array<i32>} : memref<128x128xf32, #tpu.memory_space<vmem>>, vector<128x128xf32>,
    %c0_32 = arith.constant 0 : index
    %c0_33 = arith.constant 0 : index
    %31 = vector.load %arg8[%c0_32, %c0_33] : memref<128x128xf32, #tpu.memory_space<vmem>>, vector<128x128xf32>
    %cst_34 = arith.constant dense<0.000000e+00> : vector<128x128xf32>
    %32 = tpu.matmul %1, %31, %cst_34 {dimension_numbers = #tpu.dot_dimension_numbers<[1], [0], [0], [1], [0, 0, 1, 1], [], []>} : vector<128x128xf32>, vector<128x128xf32>, vector<128x128xf32> -> vector<128x128xf32>
    %c0_35 = arith.constant 0 : index
    %c0_36 = arith.constant 0 : index
    %33 = vector.load %arg9[%c0_35, %c0_36] : memref<1x128xf32, #tpu.memory_space<vmem>>, vector<1x128xf32>
    %34 = vector.broadcast %33 : vector<1x128xf32> to vector<128x128xf32>
    %35 = arith.addf %32, %34 : vector<128x128xf32>
    %cst_37 = arith.constant 0.000000e+00 : f32
    %36 = vector.broadcast %cst_37 : f32 to vector<128x128xf32>
    %37 = arith.maximumf %35, %36 : vector<128x128xf32>
    %c0_38 = arith.constant 0 : index
    %c0_39 = arith.constant 0 : index
    %38 = vector.load %arg17[%c0_38, %c0_39] : memref<128x128xf32, #tpu.memory_space<vmem>>, vector<128x128xf32>
    %c0_40 = arith.constant 0 : index
    %c0_41 = arith.constant 0 : index
    %39 = vector.load %arg14[%c0_40, %c0_41] : memref<128x128xf32, #tpu.memory_space<vmem>>, vector<128x128xf32>
    %cst_42 = arith.constant dense<0.000000e+00> : vector<128x128xf32>
    %40 = tpu.matmul %37, %39, %cst_42 {dimension_numbers = #tpu.dot_dimension_numbers<[1], [0], [0], [1], [0, 0, 1, 1], [], []>} : vector<128x128xf32>, vector<128x128xf32>, vector<128x128xf32> -> vector<128x128xf32>
    %41 = arith.addf %38, %40 : vector<128x128xf32>
    %c0_43 = arith.constant 0 : index
    %c0_44 = arith.constant 0 : index
    %42 = vector.load %arg17[%c0_43, %c0_44] : memref<128x128xf32, #tpu.memory_space<vmem>>, vector<128x128xf32>
    tpu.vector_store %arg17[%c0_43, %c0_44], %41 {strides = array<i32>} : memref<128x128xf32, #tpu.memory_space<vmem>>, vector<128x128xf32>,
    %c0_45 = arith.constant 0 : index
    %c0_46 = arith.constant 0 : index
    %43 = vector.load %arg10[%c0_45, %c0_46] : memref<128x128xf32, #tpu.memory_space<vmem>>, vector<128x128xf32>
    %cst_47 = arith.constant dense<0.000000e+00> : vector<128x128xf32>
    %44 = tpu.matmul %1, %43, %cst_47 {dimension_numbers = #tpu.dot_dimension_numbers<[1], [0], [0], [1], [0, 0, 1, 1], [], []>} : vector<128x128xf32>, vector<128x128xf32>, vector<128x128xf32> -> vector<128x128xf32>
    %c0_48 = arith.constant 0 : index
    %c0_49 = arith.constant 0 : index
    %45 = vector.load %arg11[%c0_48, %c0_49] : memref<1x128xf32, #tpu.memory_space<vmem>>, vector<1x128xf32>
    %46 = vector.broadcast %45 : vector<1x128xf32> to vector<128x128xf32>
    %47 = arith.addf %44, %46 : vector<128x128xf32>
    %cst_50 = arith.constant 0.000000e+00 : f32
    %48 = vector.broadcast %cst_50 : f32 to vector<128x128xf32>
    %49 = arith.maximumf %47, %48 : vector<128x128xf32>
    %c0_51 = arith.constant 0 : index
    %c0_52 = arith.constant 0 : index
    %50 = vector.load %arg17[%c0_51, %c0_52] : memref<128x128xf32, #tpu.memory_space<vmem>>, vector<128x128xf32>
    %c0_53 = arith.constant 0 : index
    %c0_54 = arith.constant 0 : index
    %51 = vector.load %arg15[%c0_53, %c0_54] : memref<128x128xf32, #tpu.memory_space<vmem>>, vector<128x128xf32>
    %cst_55 = arith.constant dense<0.000000e+00> : vector<128x128xf32>
    %52 = tpu.matmul %49, %51, %cst_55 {dimension_numbers = #tpu.dot_dimension_numbers<[1], [0], [0], [1], [0, 0, 1, 1], [], []>} : vector<128x128xf32>, vector<128x128xf32>, vector<128x128xf32> -> vector<128x128xf32>
    %53 = arith.addf %50, %52 : vector<128x128xf32>
    %c0_56 = arith.constant 0 : index
    %c0_57 = arith.constant 0 : index
    %54 = vector.load %arg17[%c0_56, %c0_57] : memref<128x128xf32, #tpu.memory_space<vmem>>, vector<128x128xf32>
    tpu.vector_store %arg17[%c0_56, %c0_57], %53 {strides = array<i32>} : memref<128x128xf32, #tpu.memory_space<vmem>>, vector<128x128xf32>,
    %c0_58 = arith.constant 0 : index
    %c0_59 = arith.constant 0 : index
    %55 = vector.load %arg17[%c0_58, %c0_59] : memref<128x128xf32, #tpu.memory_space<vmem>>, vector<128x128xf32>
    %cst_60 = arith.constant 0.000000e+00 : f32
    %56 = vector.broadcast %cst_60 : f32 to vector<128x128xf32>
    %57 = arith.maximumf %55, %56 : vector<128x128xf32>
    %c0_61 = arith.constant 0 : index
    %c0_62 = arith.constant 0 : index
    %c0_63 = arith.constant 0 : index
    %58 = vector.load %arg16[%c0_61, %c0_62, %c0_63] : memref<1x128x128xf32, #tpu.memory_space<vmem>>, vector<1x128x128xf32>
    %59 = vector.shape_cast %58 : vector<1x128x128xf32> to vector<128x128xf32>
    %60 = vector.shape_cast %57 : vector<128x128xf32> to vector<1x128x128xf32>
    tpu.vector_store %arg16[%c0_61, %c0_62, %c0_63], %60 {strides = array<i32>} : memref<1x128x128xf32, #tpu.memory_space<vmem>>, vector<1x128x128xf32>,
    return
  }
  func.func @transform_0(%arg0: i32, %arg1: i32) -> (i32, i32, i32) {
    %c0_i32 = arith.constant 0 : i32
    %c0_i32_0 = arith.constant 0 : i32
    return %arg0, %arg1, %c0_i32 : i32, i32, i32
  }
  func.func @transform_1(%arg0: i32, %arg1: i32) -> (i32, i32, i32) {
    %c0_i32 = arith.constant 0 : i32
    %c0_i32_0 = arith.constant 0 : i32
    %c0_i32_1 = arith.constant 0 : i32
    return %arg0, %c0_i32, %c0_i32_0 : i32, i32, i32
  }
  func.func @transform_2(%arg0: i32, %arg1: i32) -> (i32, i32) {
    %c0_i32 = arith.constant 0 : i32
    %c0_i32_0 = arith.constant 0 : i32
    %c0_i32_1 = arith.constant 0 : i32
    return %c0_i32, %c0_i32_0 : i32, i32
  }
  func.func @transform_3(%arg0: i32, %arg1: i32) -> (i32, i32) {
    %c0_i32 = arith.constant 0 : i32
    %c0_i32_0 = arith.constant 0 : i32
    %c0_i32_1 = arith.constant 0 : i32
    return %c0_i32, %c0_i32_0 : i32, i32
  }
  func.func @transform_4(%arg0: i32, %arg1: i32) -> (i32, i32) {
    %c0_i32 = arith.constant 0 : i32
    %c0_i32_0 = arith.constant 0 : i32
    %c0_i32_1 = arith.constant 0 : i32
    return %c0_i32, %c0_i32_0 : i32, i32
  }
  func.func @transform_5(%arg0: i32, %arg1: i32) -> (i32, i32) {
    %c0_i32 = arith.constant 0 : i32
    %c0_i32_0 = arith.constant 0 : i32
    %c0_i32_1 = arith.constant 0 : i32
    return %c0_i32, %c0_i32_0 : i32, i32
  }
  func.func @transform_6(%arg0: i32, %arg1: i32) -> (i32, i32) {
    %c0_i32 = arith.constant 0 : i32
    %c0_i32_0 = arith.constant 0 : i32
    %c0_i32_1 = arith.constant 0 : i32
    return %c0_i32, %c0_i32_0 : i32, i32
  }
  func.func @transform_7(%arg0: i32, %arg1: i32) -> (i32, i32) {
    %c0_i32 = arith.constant 0 : i32
    %c0_i32_0 = arith.constant 0 : i32
    %c0_i32_1 = arith.constant 0 : i32
    return %c0_i32, %c0_i32_0 : i32, i32
  }
  func.func @transform_8(%arg0: i32, %arg1: i32) -> (i32, i32) {
    %c0_i32 = arith.constant 0 : i32
    %c0_i32_0 = arith.constant 0 : i32
    %c0_i32_1 = arith.constant 0 : i32
    return %c0_i32, %c0_i32_0 : i32, i32
  }
  func.func @transform_9(%arg0: i32, %arg1: i32) -> (i32, i32) {
    %c0_i32 = arith.constant 0 : i32
    %c0_i32_0 = arith.constant 0 : i32
    %c0_i32_1 = arith.constant 0 : i32
    return %c0_i32, %c0_i32_0 : i32, i32
  }
  func.func @transform_10(%arg0: i32, %arg1: i32) -> (i32, i32) {
    %c0_i32 = arith.constant 0 : i32
    %c0_i32_0 = arith.constant 0 : i32
    %c0_i32_1 = arith.constant 0 : i32
    return %c0_i32, %c0_i32_0 : i32, i32
  }
  func.func @transform_11(%arg0: i32, %arg1: i32) -> (i32, i32) {
    %c0_i32 = arith.constant 0 : i32
    %c0_i32_0 = arith.constant 0 : i32
    %c0_i32_1 = arith.constant 0 : i32
    return %c0_i32, %c0_i32_0 : i32, i32
  }
  func.func @transform_12(%arg0: i32, %arg1: i32) -> (i32, i32) {
    %c0_i32 = arith.constant 0 : i32
    %c0_i32_0 = arith.constant 0 : i32
    %c0_i32_1 = arith.constant 0 : i32
    return %c0_i32, %c0_i32_0 : i32, i32
  }
  func.func @transform_13(%arg0: i32, %arg1: i32) -> (i32, i32) {
    %c0_i32 = arith.constant 0 : i32
    %c0_i32_0 = arith.constant 0 : i32
    %c0_i32_1 = arith.constant 0 : i32
    return %c0_i32, %c0_i32_0 : i32, i32
  }
  func.func @transform_14(%arg0: i32, %arg1: i32) -> (i32, i32, i32) {
    %c0_i32 = arith.constant 0 : i32
    %c0_i32_0 = arith.constant 0 : i32
    return %arg0, %arg1, %c0_i32 : i32, i32, i32
  }
}

</mosaic_0001>

<bundles_post_ra>
// kernel: aspp_forward.1
= control target key start
LH: loop header
LB: loop body
LE: loop exit
PB: predicated region body
PF: predicated region fallthrough
CT: control target
= control target key end

     0   :  { %s4341_s0 = inlined_call_operand.vmem [shape: f32[2,256,128], index: 0, kind: input, shape index: {}]   ;;  %s4342_s1 = inlined_call_operand.vmem [shape: f32[2,1,128], index: 1, kind: input, shape index: {}]   ;;  %s4343_s2 = inlined_call_operand.vmem [shape: f32[128,128], index: 2, kind: input, shape index: {}]   ;;  %s4344_s3 = inlined_call_operand.vmem [shape: f32[1,128], index: 3, kind: input, shape index: {}]   ;;  %s4345_s4 = inlined_call_operand.vmem [shape: f32[128,128], index: 4, kind: input, shape index: {}]   ;;  %s4346_s5 = inlined_call_operand.vmem [shape: f32[1,128], index: 5, kind: input, shape index: {}]   ;;  %s4347_s6 = inlined_call_operand.vmem [shape: f32[128,128], index: 6, kind: input, shape index: {}]   ;;  %s4348_s7 = inlined_call_operand.vmem [shape: f32[1,128], index: 7, kind: input, shape index: {}]   ;;  %s4349_s8 = inlined_call_operand.vmem [shape: f32[128,128], index: 8, kind: input, shape index: {}]   ;;  %s4350_s9 = inlined_call_operand.vmem [shape: f32[1,128], index: 9, kind: input, shape index: {}]   ;;  %s4351_s10 = inlined_call_operand.vmem [shape: f32[128,128], index: 10, kind: input, shape index: {}]   ;;  %s4352_s11 = inlined_call_operand.vmem [shape: f32[128,128], index: 11, kind: input, shape index: {}]   ;;  %s4353_s12 = inlined_call_operand.vmem [shape: f32[128,128], index: 12, kind: input, shape index: {}]   ;;  %s4354_s13 = inlined_call_operand.vmem [shape: f32[128,128], index: 13, kind: input, shape index: {}]   ;;  %s4355_s14 = inlined_call_operand.hbm [shape: f32[2,256,128], index: 14, kind: output, shape index: {}]  }
   0x1   :  { %4365 = sst [smem:[#allocation14_spill]] %s4355_s14 }
   0x2   :  { %19 = vsyncpa [#allocation4], 0 }
   0x3   :  { %21 = vsyncpa [#allocation4 + $0x1], 0  ;;  %s3568_s29 = smov 0   ;;  %s3570_s30 = smov 0  }
   0x4   :  { %s3572_s15 = smov 0   ;;  %s3574_s16 = smov 0  }
   0x5   :  { %s3576_s17 = smov 0   ;;  %s3578_s18 = smov 0  }
   0x6   :  { %s3580_s19 = smov 0   ;;  %s3582_s20 = smov 0  }
   0x7 LB: > { %4366 = sst [smem:[#allocation6_spill]] %s3460_s29  ;;  %s2277_s21 = sadd.s32 4294967295, %s3488_s20   ;;  %s3488_s20 = sphi %s3582_s20, %s27_s20   ;;  %s3484_s19 = sphi %s3580_s19, %s4384_s19   ;;  %s3480_s18 = sphi %s3578_s18, %s4383_s18   ;;  %s3476_s17 = sphi %s3576_s17, %s4382_s17   ;;  %s3472_s16 = sphi %s3574_s16, %s4381_s16   ;;  %s3468_s15 = sphi %s3572_s15, %s4387_s15   ;;  %s3464_s30 = sphi %s3570_s30, %s4386_s30   ;;  %s3460_s29 = sphi %s3568_s29, %s4385_s29  }
   0x8   : > { %4367 = sst [smem:[#allocation7_spill]] %s3480_s18  ;;  %s2278_s22 = sadd.s32 4294967294, %s3488_s20  }
   0x9   : > { %4368 = sst [smem:[#allocation8_spill]] %s3484_s19  ;;  %s36_s23 = sadd.s32 1, %s3480_s18 }
   0xa   : > { %p37_p0 = scmp.ge.s32.totalorder %s36_s23, 2  ;;  %s39_s24 = sadd.s32 1, %s3484_s19 }
   0xb   : > { %p364_p1 = scmp.ne.s32.totalorder %s3468_s15, %s3464_s30  ;;  %p365_p2 = scmp.eq.s32.totalorder %s2277_s21, 3 }
   0xc   : > { %s4389_s23 = smov (%p37_p0, %s36_s23), 0  ;;  %s4391_s24 = smov (!%p37_p0, %s39_s24), %s3484_s19 }
   0xd   : > { %4369 = sst [smem:[#allocation9_spill]] %s4389_s23  ;;  %s350_s25 = ssub.s32 %s3480_s18, %s4389_s23 }
   0xe   : > { %p3619_p3 = por %p365_p2, %p364_p1  ;;  %p41_p4 = scmp.ge.s32.totalorder %s4391_s24, 2 }
   0xf   : > { %p370_p5 = scmp.ne.s32.totalorder %s3464_s30, %s3460_s29  ;;  %p371_p6 = scmp.eq.s32.totalorder %s2278_s22, 3 }
  0x10   : > { %s4370_s26 = scalar_select %p3619_p3, 1, 0 }
  0x11   : > { %p2281_p7 = scmp.ge.s32.totalorder %s3488_s20, 1  ;;  %s4393_s24 = smov (%p41_p4, %s4391_s24), 0 }
  0x12   : > { %4371 = sst [smem:[#allocation10_spill]] %s4370_s26  ;;  %p3628_p8 = por %p371_p6, %p370_p5 }
  0x13   : > { %4372 = sst [smem:[#allocation11_spill]] %s4393_s24  ;;  %p444_p9 = scmp.lt.s32.totalorder %s3488_s20, 5 }
  0x14   : > { %s4373_s27 = scalar_select %p3628_p8, 1, 0 }
  0x15   : > { %s349_s28 = ssub.s32 %s3484_s19, %s4393_s24  ;;  %s354_s21 = sadd.s32 1, %s3468_s15 }
  0x16   : > { %4374 = sst [smem:[#allocation12_spill]] %s4373_s27  ;;  %s351_s14 = sor.u32 %s350_s25, %s349_s28 }
  0x17   : > { %p445_p10 = pnand %p2281_p7, %p444_p9  ;;  %p352_p11 = scmp.eq.s32.totalorder %s351_s14, 0 }
  0x18   : > { %v550_v0 = vld [vmem:[%s4343_s2] sm:$0xff] (!%p445_p10)  ;;  %v551_v1 = vld [vmem:[%s4343_s2 + $0x8] sm:$0xff] (!%p445_p10)  ;;  %v552_v2 = vld [vmem:[%s4343_s2 + $0x10] sm:$0xff] (!%p445_p10)  ;;  %s3649_s25 = sshll.u32 (!%p445_p10), %s3472_s16, 4  ;;  %p498_p12 = scmp.lt.s32.totalorder (!%p445_p10), %s3476_s17, 1 }
  0x19   : > { %s3637_s23 = scalar_select %p352_p11, %s3468_s15, %s354_s21  }
  0x1a   : > { %448 = sbr.rel (%p445_p10) target bundleno = 634 (0x27a), region = 76  ;;  %v3001_v3 = vpack.c.bf16 (!%p445_p10), %v551_v1, %v550_v0  ;;  %v553_v4 = vld [vmem:[%s4343_s2 + $0x18] sm:$0xff] (!%p445_p10)  ;;  %p500_p13 = scmp.lt.s32.totalorder (!%p445_p10), %s3649_s25, 31  ;;  %v554_v6 = vld [vmem:[%s4343_s2 + $0x20] sm:$0xff] (!%p445_p10)  ;;  %v555_v7 = vld [vmem:[%s4343_s2 + $0x28] sm:$0xff] (!%p445_p10) }
  0x1b   : > { %4375 = sst [smem:[#allocation13_spill]] %s3637_s23  ;;  %v3005_v5 = vpack.c.bf16 (!%p445_p10), %v553_v4, %v552_v2  ;;  %v3009_v8 = vpack.c.bf16 (!%p445_p10), %v555_v7, %v554_v6  ;;  %v556_v9 = vld [vmem:[%s4343_s2 + $0x30] sm:$0xff] (!%p445_p10)  ;;  %v557_v10 = vld [vmem:[%s4343_s2 + $0x38] sm:$0xff] (!%p445_p10)  ;;  %v558_v13 = vld [vmem:[%s4343_s2 + $0x40] sm:$0xff] (!%p445_p10)  ;;  %s4377_s14 = sld [smem:[#allocation14_spill]] (!%p445_p10) }
  0x1c   : > { %3002 = vmatprep.subr.bf16.mxu0 (!%p445_p10), %v3001_v3  ;;  %v3013_v12 = vpack.c.bf16 (!%p445_p10), %v557_v10, %v556_v9  ;;  %v559_v14 = vld [vmem:[%s4343_s2 + $0x48] sm:$0xff] (!%p445_p10)  ;;  %v560_v16 = vld [vmem:[%s4343_s2 + $0x50] sm:$0xff] (!%p445_p10)  ;;  %v561_v17 = vld [vmem:[%s4343_s2 + $0x58] sm:$0xff] (!%p445_p10) }
  0x1d   : > { %3004 = vmatpush3.bf16.msra.mxu0 (!%p445_p10), %v3001_v3  ;;  %v3017_v15 = vpack.c.bf16 (!%p445_p10), %v559_v14, %v558_v13  ;;  %v3021_v18 = vpack.c.bf16 (!%p445_p10), %v561_v17, %v560_v16  ;;  %v562_v19 = vld [vmem:[%s4343_s2 + $0x60] sm:$0xff] (!%p445_p10)  ;;  %v563_v20 = vld [vmem:[%s4343_s2 + $0x68] sm:$0xff] (!%p445_p10)  ;;  %v564_v22 = vld [vmem:[%s4343_s2 + $0x70] sm:$0xff] (!%p445_p10) }
  0x1e   : > { %3006 = vmatprep.subr.bf16.mxu0 (!%p445_p10), %v3005_v5  ;;  %v3025_v21 = vpack.c.bf16 (!%p445_p10), %v563_v20, %v562_v19  ;;  %v565_v23 = vld [vmem:[%s4343_s2 + $0x78] sm:$0xff] (!%p445_p10)  ;;  %v943_v25 = vld [vmem:[%s4345_s4] sm:$0xff] (!%p445_p10)  ;;  %v944_v26 = vld [vmem:[%s4345_s4 + $0x8] sm:$0xff] (!%p445_p10) }
  0x1f   : > { %v3029_v24 = vpack.c.bf16 (!%p445_p10), %v565_v23, %v564_v22  ;;  %v3065_v27 = vpack.c.bf16 (!%p445_p10), %v944_v26, %v943_v25  ;;  %v945_v28 = vld [vmem:[%s4345_s4 + $0x10] sm:$0xff] (!%p445_p10)  ;;  %v946_v29 = vld [vmem:[%s4345_s4 + $0x18] sm:$0xff] (!%p445_p10)  ;;  %v750_v30 = vld [vmem:[%s4351_s10] sm:$0xff] (!%p445_p10) }
  0x20   : > { %v751_v31 = vld [vmem:[%s4351_s10 + $0x8] sm:$0xff] (!%p445_p10)  ;;  %v752_v32 = vld [vmem:[%s4351_s10 + $0x10] sm:$0xff] (!%p445_p10)  ;;  %v753_v35 = vld [vmem:[%s4351_s10 + $0x18] sm:$0xff] (!%p445_p10)  ;;  %v3069_v37 = vpack.c.bf16 (!%p445_p10), %v946_v29, %v945_v28 }
  0x21   : > { %s3663_s16 = scalar_select %p498_p12, %s3476_s17, 1  ;;  %3008 = vmatpush3.bf16.msra.mxu0 %v3005_v5  ;;  %v3033_v34 = vpack.c.bf16 %v751_v31, %v750_v30  ;;  %v947_v38 = vld [vmem:[%s4345_s4 + $0x20] sm:$0xff]  ;;  %v3037_v39 = vpack.c.bf16 %v753_v35, %v752_v32  ;;  %v948_v40 = vld [vmem:[%s4345_s4 + $0x28] sm:$0xff]  ;;  %v949_v46 = vld [vmem:[%s4345_s4 + $0x30] sm:$0xff] }
  0x22   : > { %s501_s24 = scalar_select %p500_p13, %s3649_s25, 31  ;;  %3010 = vmatprep.subr.bf16.mxu0 %v3009_v8  ;;  %v754_v41 = vld [vmem:[%s4351_s10 + $0x20] sm:$0xff]  ;;  %v755_v42 = vld [vmem:[%s4351_s10 + $0x28] sm:$0xff]  ;;  %v3073_v45 = vpack.c.bf16 %v948_v40, %v947_v38  ;;  %v950_v48 = vld [vmem:[%s4345_s4 + $0x38] sm:$0xff] }
  0x23   : > { %s2284_s27 = sshll.u32 %s3663_s16, 5  ;;  %3034 = vmatprep.subr.bf16.mxu1 %v3033_v34  ;;  %v3041_v47 = vpack.c.bf16 %v755_v42, %v754_v41  ;;  %v756_v49 = vld [vmem:[%s4351_s10 + $0x30] sm:$0xff]  ;;  %v757_v50 = vld [vmem:[%s4351_s10 + $0x38] sm:$0xff]  ;;  %v3077_v53 = vpack.c.bf16 %v950_v48, %v949_v46  ;;  %v951_v54 = vld [vmem:[%s4345_s4 + $0x40] sm:$0xff] }
  0x24   : > { %s503_s22 = sadd.s32 %s2284_s27, %s501_s24  ;;  %3036 = vmatpush3.bf16.msra.mxu1 %v3033_v34  ;;  %v3045_v55 = vpack.c.bf16 %v757_v50, %v756_v49  ;;  %v952_v56 = vld [vmem:[%s4345_s4 + $0x48] sm:$0xff]  ;;  %v758_v57 = vld [vmem:[%s4351_s10 + $0x40] sm:$0xff]  ;;  %v953_v62 = vld [vmem:[%s4345_s4 + $0x50] sm:$0xff] }
  0x25   : > { %s2285_s26 = sshll.u32 %s503_s22, 3  ;;  %3012 = vmatpush3.bf16.msra.mxu0 %v3009_v8  ;;  %3038 = vmatprep.subr.bf16.mxu1 %v3037_v39  ;;  %v759_v58 = vld [vmem:[%s4351_s10 + $0x48] sm:$0xff]  ;;  %v3081_v61 = vpack.c.bf16 %v952_v56, %v951_v54  ;;  %v954_v0 = vld [vmem:[%s4345_s4 + $0x58] sm:$0xff]  ;;  %v760_v1 = vld [vmem:[%s4351_s10 + $0x50] sm:$0xff]  ;;  %s494_s22 = sand.u32 1, %s3464_s30  }
  0x26   : > { %s3676_s23 = scalar_lea.vmem %s4341_s0, %s2285_s26  ;;  %3014 = vmatprep.subr.bf16.mxu0 %v3013_v12  ;;  %v3049_v63 = vpack.c.bf16 %v759_v58, %v758_v57  ;;  %v761_v2 = vld [vmem:[%s4351_s10 + $0x58] sm:$0xff]  ;;  %v3085_v5 = vpack.c.bf16 %v954_v0, %v953_v62  ;;  %v955_v6 = vld [vmem:[%s4345_s4 + $0x60] sm:$0xff]  ;;  %v956_v8 = vld [vmem:[%s4345_s4 + $0x68] sm:$0xff]  ;;  %s2282_s18 = sshll.u32 %s494_s22, 7 }
  0x27   : > { %v3679_v11 = vld [vmem:[%s3676_s23] sm:$0xff]  ;;  %v3728_v33 = vld [vmem:[%s3676_s23 + $0x8] sm:$0xff]  ;;  %v3734_v36 = vld [vmem:[%s3676_s23 + $0x10] sm:$0xff]  ;;  %v3053_v7 = vpack.c.bf16 %v761_v2, %v760_v1  ;;  %v3089_v14 = vpack.c.bf16 %v956_v8, %v955_v6  ;;  %s4245_s28 = scalar_lea.vmem [#allocation3], %s2282_s18  ;;  %s4289_s19 = scalar_lea.sflag [#allocation4], %s494_s22 }
  0x28   : > { %2585 = vmatprep.mubr.f32.mxu0 %v3679_v11  ;;  %v3751_v43 = vld [vmem:[%s3676_s23 + $0x18] sm:$0xff]  ;;  %v3754_v44 = vld [vmem:[%s3676_s23 + $0x20] sm:$0xff]  ;;  %3040 = vmatpush3.bf16.msra.mxu1 %v3037_v39  ;;  %v3771_v51 = vld [vmem:[%s3676_s23 + $0x28] sm:$0xff]  ;;  %s2186_s24 = sshll.u32 %s4245_s28, 4  ;;  %s3490_s18 = smov [#allocation3]   ;;  %s4283_s24 = int_to_ptr.vmem [resolvable:$true] %s2186_s24 }
  0x29   : > { %3016 = vmatpush3.bf16.msra.mxu0 %v3013_v12  ;;  %v3774_v52 = vld [vmem:[%s3676_s23 + $0x30] sm:$0xff]  ;;  %3042 = vmatprep.subr.bf16.mxu1 %v3041_v47  ;;  %v3791_v59 = vld [vmem:[%s3676_s23 + $0x38] sm:$0xff]  ;;  %v3794_v60 = vld [vmem:[%s3676_s23 + $0x40] sm:$0xff] }
  0x2a   : > { %3018 = vmatprep.subr.bf16.mxu0 %v3017_v15  ;;  %v3811_v3 = vld [vmem:[%s3676_s23 + $0x48] sm:$0xff]  ;;  %v3814_v4 = vld [vmem:[%s3676_s23 + $0x50] sm:$0xff]  ;;  %v762_v9 = vld [vmem:[%s4351_s10 + $0x60] sm:$0xff] }
  0x2b   : > { %v763_v10 = vld [vmem:[%s4351_s10 + $0x68] sm:$0xff]  ;;  %v3831_v12 = vld [vmem:[%s3676_s23 + $0x58] sm:$0xff]  ;;  %v3834_v13 = vld [vmem:[%s3676_s23 + $0x60] sm:$0xff] }
  0x2c   : > { %3044 = vmatpush3.bf16.msra.mxu1 %v3041_v47  ;;  %v957_v16 = vld [vmem:[%s4345_s4 + $0x70] sm:$0xff]  ;;  %v958_v17 = vld [vmem:[%s4345_s4 + $0x78] sm:$0xff]  ;;  %v1337_v22 = vld [vmem:[%s4347_s6 + $0x8] sm:$0xff] }
  0x2d   : > { %3020 = vmatpush3.bf16.msra.mxu0 %v3017_v15  ;;  %3046 = vmatprep.subr.bf16.mxu1 %v3045_v55  ;;  %v3057_v15 = vpack.c.bf16 %v763_v10, %v762_v9  ;;  %v3848_v19 = vld [vmem:[%s3676_s23 + $0x70] sm:$0xff]  ;;  %v3093_v20 = vpack.c.bf16 %v958_v17, %v957_v16  ;;  %v3859_v23 = vld [vmem:[%s3676_s23 + $0x78] sm:$0xff]  ;;  %v1340_v28 = vld [vmem:[%s4347_s6 + $0x20] sm:$0xff] }
  0x2e   : > { %3022 = vmatprep.subr.bf16.mxu0 %v3021_v18  ;;  %v1338_v25 = vld [vmem:[%s4347_s6 + $0x10] sm:$0xff]  ;;  %v1339_v26 = vld [vmem:[%s4347_s6 + $0x18] sm:$0xff]  ;;  %v1341_v29 = vld [vmem:[%s4347_s6 + $0x28] sm:$0xff] }
  0x2f   : > { %v3137_v30 = vpack.c.bf16 %v1341_v29, %v1340_v28  ;;  %v1342_v31 = vld [vmem:[%s4347_s6 + $0x30] sm:$0xff]  ;;  %v1343_v32 = vld [vmem:[%s4347_s6 + $0x38] sm:$0xff]  ;;  %v1344_v35 = vld [vmem:[%s4347_s6 + $0x40] sm:$0xff] }
  0x30   : > { %3048 = vmatpush3.bf16.msra.mxu1 %v3045_v55  ;;  %v3141_v34 = vpack.c.bf16 %v1343_v32, %v1342_v31  ;;  %v1346_v39 = vld [vmem:[%s4347_s6 + $0x50] sm:$0xff]  ;;  %v1347_v40 = vld [vmem:[%s4347_s6 + $0x58] sm:$0xff]  ;;  %v1348_v42 = vld [vmem:[%s4347_s6 + $0x60] sm:$0xff] }
  0x31   : > { %3024 = vmatpush3.bf16.msra.mxu0 %v3021_v18  ;;  %3050 = vmatprep.subr.bf16.mxu1 %v3049_v63  ;;  %v3845_v18 = vld [vmem:[%s3676_s23 + $0x68] sm:$0xff]  ;;  %v3149_v41 = vpack.c.bf16 %v1347_v40, %v1346_v39  ;;  %v1350_v47 = vld [vmem:[%s4347_s6 + $0x70] sm:$0xff]  ;;  %v1351_v48 = vld [vmem:[%s4347_s6 + $0x78] sm:$0xff]  ;;  %s509_s23 = scalar_lea.vmem %s4342_s1, %s3663_s16  ;;  %s2293_s16 = sshll.u32 %s3476_s17, 5 }
  0x32   : > { %3026 = vmatprep.subr.bf16.mxu0 %v3025_v21  ;;  %v3157_v49 = vpack.c.bf16 %v1351_v48, %v1350_v47  ;;  %v1729_v50 = vld [vmem:[%s4349_s8] sm:$0xff]  ;;  %v1731_v55 = vld [vmem:[%s4349_s8 + $0x10] sm:$0xff]  ;;  %v1732_v56 = vld [vmem:[%s4349_s8 + $0x18] sm:$0xff]  ;;  %s2183_s26 = sadd.s32 %s2293_s16, %s3649_s25  ;;  %s3398_s16 = sshll.u32 %s3490_s18, 4  ;;  %s3399_s16 = int_to_ptr.vmem [resolvable:$false] %s3398_s16 }
  0x33   : > { %v3197_v57 = vpack.c.bf16 %v1732_v56, %v1731_v55  ;;  %v1733_v58 = vld [vmem:[%s4349_s8 + $0x20] sm:$0xff]  ;;  %v1736_v0 = vld [vmem:[%s4349_s8 + $0x38] sm:$0xff]  ;;  %v1743_v16 = vld [vmem:[%s4349_s8 + $0x70] sm:$0xff]  ;;  %s2294_s17 = sshll.u32 %s2183_s26, 7  ;;  %s3400_s26 = scalar_lea.vmem %s3399_s16, 4096 }
  0x34   : > { %3052 = vmatpush3.bf16.msra.mxu1 %v3049_v63  ;;  %v1735_v63 = vld [vmem:[%s4349_s8 + $0x30] sm:$0xff]  ;;  %v1737_v2 = vld [vmem:[%s4349_s8 + $0x40] sm:$0xff]  ;;  %v1740_v8 = vld [vmem:[%s4349_s8 + $0x58] sm:$0xff]  ;;  %s4279_s29 = scalar_lea.hbm %s4377_s14, %s2294_s17  ;;  %p3401_p4 = scmp.lt.s32.totalorder %s4283_s24, %s3399_s16 }
  0x35   : > { %3028 = vmatpush3.bf16.msra.mxu0 %v3025_v21  ;;  %3054 = vmatprep.subr.bf16.mxu1 %v3053_v7  ;;  %v1336_v21 = vld [vmem:[%s4347_s6] sm:$0xff]  ;;  %v3205_v1 = vpack.c.bf16 %v1736_v0, %v1735_v63  ;;  %v1744_v17 = vld [vmem:[%s4349_s8 + $0x78] sm:$0xff] }
  0x36   : > { %3030 = vmatprep.subr.bf16.mxu0 %v3029_v24  ;;  %v1741_v10 = vld [vmem:[%s4349_s8 + $0x60] sm:$0xff] }
  0x37   : > { %v1151_v48 = vld [vmem:[%s4352_s11 + $0x40] sm:$0xff] }
  0x38   : > { %3056 = vmatpush3.bf16.msra.mxu1 %v3053_v7  ;;  %v1739_v7 = vld [vmem:[%s4349_s8 + $0x50] sm:$0xff] }
  0x39   : > { %3032 = vmatpush3.bf16.msra.mxu0 %v3029_v24  ;;  %3058 = vmatprep.subr.bf16.mxu1 %v3057_v15  ;;  %v3129_v24 = vpack.c.bf16 %v1337_v22, %v1336_v21  ;;  %v3213_v9 = vpack.c.bf16 %v1740_v8, %v1739_v7  ;;  %v765_v21 = vld [vmem:[%s4351_s10 + $0x78] sm:$0xff]  ;;  %v1155_v8 = vld [vmem:[%s4352_s11 + $0x60] sm:$0xff] }
  0x3a   : > { %3066 = vmatprep.subr.bf16.mxu0 %v3065_v27 }
  0x3c   : > { %2586 = vmatmul.mubr.f32.vlgmr.msra.gmra.mrb[0].mxu0 %v3728_v33  ;;  %3060 = vmatpush3.bf16.msra.mxu1 %v3057_v15 }
  0x3d   : > { %3068 = vmatpush3.bf16.msra.mxu0 %v3065_v27  ;;  %2588 = vmatprep.mubr.f32.mxu0 %v3734_v36  ;;  %v3133_v27 = vpack.c.bf16 %v1339_v26, %v1338_v25  ;;  %v1143_v25 = vld [vmem:[%s4352_s11] sm:$0xff]  ;;  %v1144_v26 = vld [vmem:[%s4352_s11 + $0x8] sm:$0xff] }
  0x3e   : > { %3070 = vmatprep.subr.bf16.mxu0 %v3069_v37 }
  0x40   : > { %2589 = vmatmul.mubr.f32.gmra.mrb[2].mxu0 %v3751_v43 }
  0x41   : > { %3072 = vmatpush3.bf16.msra.mxu0 %v3069_v37  ;;  %2591 = vmatprep.mubr.f32.mxu0 %v3754_v44  ;;  %v1345_v37 = vld [vmem:[%s4347_s6 + $0x48] sm:$0xff] }
  0x42   : > { %3074 = vmatprep.subr.bf16.mxu0 %v3073_v45  ;;  %v3145_v38 = vpack.c.bf16 %v1345_v37, %v1344_v35  ;;  %v1149_v37 = vld [vmem:[%s4352_s11 + $0x30] sm:$0xff] }
  0x44   : > { %2592 = vmatmul.mubr.f32.gmra.mrb[4].mxu0 %v3771_v51 }
  0x45   : > { %3076 = vmatpush3.bf16.msra.mxu0 %v3073_v45  ;;  %2594 = vmatprep.mubr.f32.mxu0 %v3774_v52  ;;  %v1349_v45 = vld [vmem:[%s4347_s6 + $0x68] sm:$0xff] }
  0x46   : > { %3078 = vmatprep.subr.bf16.mxu0 %v3077_v53  ;;  %v3153_v46 = vpack.c.bf16 %v1349_v45, %v1348_v42 }
  0x48   : > { %2595 = vmatmul.mubr.f32.gmra.mrb[6].mxu0 %v3791_v59 }
  0x49   : > { %3080 = vmatpush3.bf16.msra.mxu0 %v3077_v53  ;;  %2597 = vmatprep.mubr.f32.mxu0 %v3794_v60  ;;  %v1730_v53 = vld [vmem:[%s4349_s8 + $0x8] sm:$0xff] }
  0x4a   : > { %3082 = vmatprep.subr.bf16.mxu0 %v3081_v61  ;;  %v3193_v54 = vpack.c.bf16 %v1730_v53, %v1729_v50 }
  0x4c   : > { %2598 = vmatmul.mubr.f32.gmra.mrb[8].mxu0 %v3811_v3 }
  0x4d   : > { %3084 = vmatpush3.bf16.msra.mxu0 %v3081_v61  ;;  %2600 = vmatprep.mubr.f32.mxu0 %v3814_v4  ;;  %v1734_v61 = vld [vmem:[%s4349_s8 + $0x28] sm:$0xff] }
  0x4e   : > { %3086 = vmatprep.subr.bf16.mxu0 %v3085_v5  ;;  %v3201_v62 = vpack.c.bf16 %v1734_v61, %v1733_v58  ;;  %v1153_v61 = vld [vmem:[%s4352_s11 + $0x50] sm:$0xff] }
  0x50   : > { %2601 = vmatmul.mubr.f32.gmra.mrb[10].mxu0 %v3831_v12 }
  0x51   : > { %3088 = vmatpush3.bf16.msra.mxu0 %v3085_v5  ;;  %2603 = vmatprep.mubr.f32.mxu0 %v3834_v13  ;;  %v1738_v5 = vld [vmem:[%s4349_s8 + $0x48] sm:$0xff] }
  0x52   : > { %3090 = vmatprep.subr.bf16.mxu0 %v3089_v14  ;;  %v3209_v6 = vpack.c.bf16 %v1738_v5, %v1737_v2 }
  0x54   : > { %2604 = vmatmul.mubr.f32.gmra.mrb[12].mxu0 %v3845_v18 }
  0x55   : > { %3092 = vmatpush3.bf16.msra.mxu0 %v3089_v14  ;;  %2606 = vmatprep.mubr.f32.mxu0 %v3848_v19  ;;  %v1742_v14 = vld [vmem:[%s4349_s8 + $0x68] sm:$0xff] }
  0x56   : > { %3094 = vmatprep.subr.bf16.mxu0 %v3093_v20  ;;  %v3217_v15 = vpack.c.bf16 %v1742_v14, %v1741_v10 }
  0x58   : > { %2607 = vmatmul.mubr.f32.gmra.mrb[14].mxu0 %v3859_v23 }
  0x59   : > { %3096 = vmatpush3.bf16.msra.mxu0 %v3093_v20  ;;  %2697 = vmatprep.mubr.f32.mxu0 %v3679_v11  ;;  %v764_v20 = vld [vmem:[%s4351_s10 + $0x70] sm:$0xff] }
  0x5a   : > { %3130 = vmatprep.subr.bf16.mxu0 %v3129_v24  ;;  %v3061_v22 = vpack.c.bf16 %v765_v21, %v764_v20 }
  0x5c   : > { %2698 = vmatmul.mubr.f32.vlgmr.msra.gmra.mrb[16].mxu0 %v3728_v33  ;;  %3062 = vmatprep.subr.bf16.mxu1 %v3061_v22 }
  0x5d   : > { %3132 = vmatpush3.bf16.msra.mxu0 %v3129_v24  ;;  %2700 = vmatprep.mubr.f32.mxu0 %v3734_v36  ;;  %v3221_v24 = vpack.c.bf16 %v1744_v17, %v1743_v16 }
  0x5e   : > { %3134 = vmatprep.subr.bf16.mxu0 %v3133_v27  ;;  %3064 = vmatpush3.bf16.msra.mxu1 %v3061_v22  ;;  %v1157_v22 = vld [vmem:[%s4352_s11 + $0x70] sm:$0xff] }
  0x60   : > { %2701 = vmatmul.mubr.f32.gmra.mrb[18].mxu0 %v3751_v43 }
  0x61   : > { %3136 = vmatpush3.bf16.msra.mxu0 %v3133_v27  ;;  %2703 = vmatprep.mubr.f32.mxu0 %v3754_v44  ;;  %v3097_v27 = vpack.c.bf16 %v1144_v26, %v1143_v25 }
  0x62   : > { %3138 = vmatprep.subr.bf16.mxu0 %v3137_v30 }
  0x63   : > { %3098 = vmatprep.subr.bf16.mxu1 %v3097_v27 }
  0x64   : > { %2704 = vmatmul.mubr.f32.gmra.mrb[20].mxu0 %v3771_v51 }
  0x65   : > { %3140 = vmatpush3.bf16.msra.mxu0 %v3137_v30  ;;  %2706 = vmatprep.mubr.f32.mxu0 %v3774_v52 }
  0x66   : > { %3142 = vmatprep.subr.bf16.mxu0 %v3141_v34 }
  0x68   : > { %2707 = vmatmul.mubr.f32.gmra.mrb[22].mxu0 %v3791_v59 }
  0x69   : > { %3144 = vmatpush3.bf16.msra.mxu0 %v3141_v34  ;;  %2709 = vmatprep.mubr.f32.mxu0 %v3794_v60 }
  0x6a   : > { %3146 = vmatprep.subr.bf16.mxu0 %v3145_v38 }
  0x6c   : > { %2710 = vmatmul.mubr.f32.gmra.mrb[24].mxu0 %v3811_v3 }
  0x6d   : > { %3148 = vmatpush3.bf16.msra.mxu0 %v3145_v38  ;;  %2712 = vmatprep.mubr.f32.mxu0 %v3814_v4  ;;  %v1150_v38 = vld [vmem:[%s4352_s11 + $0x38] sm:$0xff] }
  0x6e   : > { %3150 = vmatprep.subr.bf16.mxu0 %v3149_v41 }
  0x70   : > { %2713 = vmatmul.mubr.f32.gmra.mrb[26].mxu0 %v3831_v12 }
  0x71   : > { %3152 = vmatpush3.bf16.msra.mxu0 %v3149_v41  ;;  %2715 = vmatprep.mubr.f32.mxu0 %v3834_v13 }
  0x72   : > { %3154 = vmatprep.subr.bf16.mxu0 %v3153_v46 }
  0x74   : > { %2716 = vmatmul.mubr.f32.gmra.mrb[28].mxu0 %v3845_v18 }
  0x75   : > { %3156 = vmatpush3.bf16.msra.mxu0 %v3153_v46  ;;  %2718 = vmatprep.mubr.f32.mxu0 %v3848_v19  ;;  %v3109_v46 = vpack.c.bf16 %v1150_v38, %v1149_v37  ;;  %v1540_v37 = vld [vmem:[%s4353_s12 + $0x20] sm:$0xff]  ;;  %v1541_v38 = vld [vmem:[%s4353_s12 + $0x28] sm:$0xff] }
  0x76   : > { %3158 = vmatprep.subr.bf16.mxu0 %v3157_v49 }
  0x78   : > { %2719 = vmatmul.mubr.f32.gmra.mrb[30].mxu0 %v3859_v23 }
  0x79   : > { %3160 = vmatpush3.bf16.msra.mxu0 %v3157_v49  ;;  %2809 = vmatprep.mubr.f32.mxu0 %v3679_v11  ;;  %v1152_v49 = vld [vmem:[%s4352_s11 + $0x48] sm:$0xff] }
  0x7a   : > { %3194 = vmatprep.subr.bf16.mxu0 %v3193_v54 }
  0x7c   : > { %2810 = vmatmul.mubr.f32.vlgmr.msra.gmra.mrb[32].mxu0 %v3728_v33 }
  0x7d   : > { %3196 = vmatpush3.bf16.msra.mxu0 %v3193_v54  ;;  %2812 = vmatprep.mubr.f32.mxu0 %v3734_v36 }
  0x7e   : > { %3198 = vmatprep.subr.bf16.mxu0 %v3197_v57 }
  0x80   : > { %2813 = vmatmul.mubr.f32.gmra.mrb[34].mxu0 %v3751_v43 }
  0x81   : > { %3200 = vmatpush3.bf16.msra.mxu0 %v3197_v57  ;;  %2815 = vmatprep.mubr.f32.mxu0 %v3754_v44  ;;  %v3113_v57 = vpack.c.bf16 %v1152_v49, %v1151_v48  ;;  %v1542_v48 = vld [vmem:[%s4353_s12 + $0x30] sm:$0xff]  ;;  %v1543_v49 = vld [vmem:[%s4353_s12 + $0x38] sm:$0xff] }
  0x82   : > { %3202 = vmatprep.subr.bf16.mxu0 %v3201_v62 }
  0x84   : > { %2816 = vmatmul.mubr.f32.gmra.mrb[36].mxu0 %v3771_v51 }
  0x85   : > { %3204 = vmatpush3.bf16.msra.mxu0 %v3201_v62  ;;  %2818 = vmatprep.mubr.f32.mxu0 %v3774_v52  ;;  %v1154_v62 = vld [vmem:[%s4352_s11 + $0x58] sm:$0xff] }
  0x86   : > { %3206 = vmatprep.subr.bf16.mxu0 %v3205_v1 }
  0x88   : > { %2819 = vmatmul.mubr.f32.gmra.mrb[38].mxu0 %v3791_v59 }
  0x89   : > { %3208 = vmatpush3.bf16.msra.mxu0 %v3205_v1  ;;  %2821 = vmatprep.mubr.f32.mxu0 %v3794_v60 }
  0x8a   : > { %3210 = vmatprep.subr.bf16.mxu0 %v3209_v6 }
  0x8c   : > { %2822 = vmatmul.mubr.f32.gmra.mrb[40].mxu0 %v3811_v3 }
  0x8d   : > { %3212 = vmatpush3.bf16.msra.mxu0 %v3209_v6  ;;  %2824 = vmatprep.mubr.f32.mxu0 %v3814_v4  ;;  %v3117_v6 = vpack.c.bf16 %v1154_v62, %v1153_v61  ;;  %v1544_v61 = vld [vmem:[%s4353_s12 + $0x40] sm:$0xff]  ;;  %v1545_v62 = vld [vmem:[%s4353_s12 + $0x48] sm:$0xff] }
  0x8e   : > { %3214 = vmatprep.subr.bf16.mxu0 %v3213_v9 }
  0x90   : > { %2825 = vmatmul.mubr.f32.gmra.mrb[42].mxu0 %v3831_v12 }
  0x91   : > { %3216 = vmatpush3.bf16.msra.mxu0 %v3213_v9  ;;  %2827 = vmatprep.mubr.f32.mxu0 %v3834_v13  ;;  %v1156_v9 = vld [vmem:[%s4352_s11 + $0x68] sm:$0xff] }
  0x92   : > { %3218 = vmatprep.subr.bf16.mxu0 %v3217_v15  ;;  %v3121_v20 = vpack.c.bf16 %v1156_v9, %v1155_v8  ;;  %v1546_v8 = vld [vmem:[%s4353_s12 + $0x50] sm:$0xff]  ;;  %v1547_v9 = vld [vmem:[%s4353_s12 + $0x58] sm:$0xff] }
  0x94   : > { %2828 = vmatmul.mubr.f32.gmra.mrb[44].mxu0 %v3845_v18 }
  0x95   : > { %3220 = vmatpush3.bf16.msra.mxu0 %v3217_v15  ;;  %2830 = vmatprep.mubr.f32.mxu0 %v3848_v19 }
  0x96   : > { %3222 = vmatprep.subr.bf16.mxu0 %v3221_v24 }
  0x98   : > { %2831 = vmatmul.mubr.f32.gmra.mrb[46].mxu0 %v3859_v23 }
  0x99   : > { %3224 = vmatpush3.bf16.msra.mxu0 %v3221_v24  ;;  %2921 = vmatprep.mubr.f32.mxu0 %v3679_v11  ;;  %v4015_v11 = vld [vmem:[%s4344_s3] ss:$0 sm:$0xff]  ;;  %v1158_v24 = vld [vmem:[%s4352_s11 + $0x78] sm:$0xff] }
  0x9c   : > { %2922 = vmatmul.mubr.f32.vlgmr.msra.gmra.mrb[48].mxu0 %v3728_v33 }
  0x9d   : > { %2924 = vmatprep.mubr.f32.mxu0 %v3734_v36 }
  0xa0   : > { %2925 = vmatmul.mubr.f32.gmra.mrb[50].mxu0 %v3751_v43 }
  0xa1   : > { %2927 = vmatprep.mubr.f32.mxu0 %v3754_v44 }
  0xa4   : > { %2928 = vmatmul.mubr.f32.gmra.mrb[52].mxu0 %v3771_v51  ;;  %v1145_v51 = vld [vmem:[%s4352_s11 + $0x10] sm:$0xff] }
  0xa5   : > { %2930 = vmatprep.mubr.f32.mxu0 %v3774_v52  ;;  %v1146_v52 = vld [vmem:[%s4352_s11 + $0x18] sm:$0xff] }
  0xa8   : > { %2931 = vmatmul.mubr.f32.gmra.mrb[54].mxu0 %v3791_v59 }
  0xa9   : > { %2933 = vmatprep.mubr.f32.mxu0 %v3794_v60 }
  0xac   : > { %2934 = vmatmul.mubr.f32.gmra.mrb[56].mxu0 %v3811_v3 }
  0xad   : > { %2936 = vmatprep.mubr.f32.mxu0 %v3814_v4 }
  0xb0   : > { %2937 = vmatmul.mubr.f32.gmra.mrb[58].mxu0 %v3831_v12 }
  0xb1   : > { %2939 = vmatprep.mubr.f32.mxu0 %v3834_v13  ;;  %v3101_v13 = vpack.c.bf16 %v1146_v52, %v1145_v51  ;;  %v4078_v51 = vld [vmem:[%s4346_s5] ss:$0 sm:$0xff] }
  0xb2   : > { %v1536_v52 = vld [vmem:[%s4353_s12] sm:$0xff] }
  0xb4   : > { %2940 = vmatmul.mubr.f32.gmra.mrb[60].mxu0 %v3845_v18 }
  0xb5   : > { %2942 = vmatprep.mubr.f32.mxu0 %v3848_v19  ;;  %v1147_v19 = vld [vmem:[%s4352_s11 + $0x20] sm:$0xff] }
  0xb8   : > { %2943 = vmatmul.mubr.f32.gmra.mrb[62].mxu0 %v3859_v23  ;;  %v1148_v23 = vld [vmem:[%s4352_s11 + $0x28] sm:$0xff] }
  0xb9   : > { %v3105_v34 = vpack.c.bf16 %v1148_v23, %v1147_v19  ;;  %v1538_v19 = vld [vmem:[%s4353_s12 + $0x10] sm:$0xff]  ;;  %v1539_v23 = vld [vmem:[%s4353_s12 + $0x18] sm:$0xff] }
 0x10f   : > { %v2587_v33 = vpop.f32.mrb[0].mxu0 }
 0x110   : > { %v645_v36 = vadd.f32 %v2587_v33, %v4015_v11  ;;  %v639_v43 = vpop.f32.mrb[1].mxu0 }
 0x111   : > { %v640_v44 = vadd.f32 %v4015_v11, %v639_v43  ;;  %v3125_v43 = vpack.c.bf16 %v1158_v24, %v1157_v22  ;;  %v1548_v22 = vld [vmem:[%s4353_s12 + $0x60] sm:$0xff]  ;;  %v1549_v24 = vld [vmem:[%s4353_s12 + $0x68] sm:$0xff] }
 0x112   : > { %v719_v3 = vmax.f32 %v645_v36, 0.0 }
 0x113   : > { %v2590_v59 = vpop.f32.mrb[2].mxu0  ;;  %v718_v60 = vmax.f32 %v640_v44, 0.0 }
 0x114   : > { %v655_v4 = vadd.f32 %v2590_v59, %v4015_v11  ;;  %v649_v12 = vpop.f32.mrb[3].mxu0  ;;  %v1537_v59 = vld [vmem:[%s4353_s12 + $0x8] sm:$0xff] }
 0x115   : > { %v650_v18 = vadd.f32 %v4015_v11, %v649_v12  ;;  %2641 = vmatprep.mubr.f32.mxu1 %v718_v60 }
 0x116   : > { %2642 = vmatmul.mubr.f32.vlgmr.msra.gmra.mrb[0].mxu1 %v719_v3  ;;  %v721_v30 = vmax.f32 %v655_v4, 0.0 }
 0x117   : > { %v720_v28 = vmax.f32 %v650_v18, 0.0  ;;  %v2593_v29 = vpop.f32.mrb[4].mxu0  ;;  %3100 = vmatpush3.bf16.msra.mxu1 %v3097_v27 }
 0x118   : > { %v665_v31 = vadd.f32 %v2593_v29, %v4015_v11  ;;  %v659_v32 = vpop.f32.mrb[5].mxu0  ;;  %3102 = vmatprep.subr.bf16.mxu1 %v3101_v13 }
 0x119   : > { %v660_v35 = vadd.f32 %v4015_v11, %v659_v32  ;;  %2644 = vmatprep.mubr.f32.mxu1 %v720_v28 }
 0x11a   : > { %2645 = vmatmul.mubr.f32.gmra.mrb[2].mxu1 %v721_v30  ;;  %v723_v41 = vmax.f32 %v665_v31, 0.0 }
 0x11b   : > { %v722_v39 = vmax.f32 %v660_v35, 0.0  ;;  %v2596_v40 = vpop.f32.mrb[6].mxu0  ;;  %3104 = vmatpush3.bf16.msra.mxu1 %v3101_v13  ;;  %v3161_v13 = vpack.c.bf16 %v1537_v59, %v1536_v52  ;;  %v1550_v52 = vld [vmem:[%s4353_s12 + $0x70] sm:$0xff]  ;;  %v1551_v59 = vld [vmem:[%s4353_s12 + $0x78] sm:$0xff] }
 0x11c   : > { %v675_v42 = vadd.f32 %v2596_v40, %v4015_v11  ;;  %v669_v45 = vpop.f32.mrb[7].mxu0  ;;  %3106 = vmatprep.subr.bf16.mxu1 %v3105_v34 }
 0x11d   : > { %v670_v47 = vadd.f32 %v4015_v11, %v669_v45  ;;  %2647 = vmatprep.mubr.f32.mxu1 %v722_v39 }
 0x11e   : > { %2648 = vmatmul.mubr.f32.gmra.mrb[4].mxu1 %v723_v41  ;;  %v725_v54 = vmax.f32 %v675_v42, 0.0 }
 0x11f   : > { %v724_v50 = vmax.f32 %v670_v47, 0.0  ;;  %v2599_v53 = vpop.f32.mrb[8].mxu0  ;;  %3108 = vmatpush3.bf16.msra.mxu1 %v3105_v34  ;;  %v3165_v34 = vpack.c.bf16 %v1539_v23, %v1538_v19  ;;  %v4147_v19 = vld [vmem:[%s4348_s7] ss:$0 sm:$0xff] }
 0x120   : > { %v685_v55 = vadd.f32 %v2599_v53, %v4015_v11  ;;  %v679_v56 = vpop.f32.mrb[9].mxu0  ;;  %3110 = vmatprep.subr.bf16.mxu1 %v3109_v46  ;;  %v1929_v23 = vld [vmem:[%s4354_s13] sm:$0xff] }
 0x121   : > { %v680_v58 = vadd.f32 %v4015_v11, %v679_v56  ;;  %2650 = vmatprep.mubr.f32.mxu1 %v724_v50 }
 0x122   : > { %2651 = vmatmul.mubr.f32.gmra.mrb[6].mxu1 %v725_v54  ;;  %v727_v1 = vmax.f32 %v685_v55, 0.0 }
 0x123   : > { %v726_v63 = vmax.f32 %v680_v58, 0.0  ;;  %v2602_v0 = vpop.f32.mrb[10].mxu0  ;;  %3112 = vmatpush3.bf16.msra.mxu1 %v3109_v46  ;;  %v3169_v46 = vpack.c.bf16 %v1541_v38, %v1540_v37  ;;  %v1931_v37 = vld [vmem:[%s4354_s13 + $0x10] sm:$0xff]  ;;  %v1932_v38 = vld [vmem:[%s4354_s13 + $0x18] sm:$0xff] }
 0x124   : > { %v695_v2 = vadd.f32 %v2602_v0, %v4015_v11  ;;  %v689_v5 = vpop.f32.mrb[11].mxu0  ;;  %3114 = vmatprep.subr.bf16.mxu1 %v3113_v57 }
 0x125   : > { %v690_v7 = vadd.f32 %v4015_v11, %v689_v5  ;;  %2653 = vmatprep.mubr.f32.mxu1 %v726_v63 }
 0x126   : > { %2654 = vmatmul.mubr.f32.gmra.mrb[8].mxu1 %v727_v1  ;;  %v729_v15 = vmax.f32 %v695_v2, 0.0 }
 0x127   : > { %v728_v10 = vmax.f32 %v690_v7, 0.0  ;;  %v2605_v14 = vpop.f32.mrb[12].mxu0  ;;  %3116 = vmatpush3.bf16.msra.mxu1 %v3113_v57  ;;  %v3173_v57 = vpack.c.bf16 %v1543_v49, %v1542_v48  ;;  %v1933_v48 = vld [vmem:[%s4354_s13 + $0x20] sm:$0xff]  ;;  %v1934_v49 = vld [vmem:[%s4354_s13 + $0x28] sm:$0xff] }
 0x128   : > { %v705_v16 = vadd.f32 %v2605_v14, %v4015_v11  ;;  %v699_v17 = vpop.f32.mrb[13].mxu0  ;;  %3118 = vmatprep.subr.bf16.mxu1 %v3117_v6 }
 0x129   : > { %v700_v21 = vadd.f32 %v4015_v11, %v699_v17  ;;  %2656 = vmatprep.mubr.f32.mxu1 %v728_v10 }
 0x12a   : > { %2657 = vmatmul.mubr.f32.gmra.mrb[10].mxu1 %v729_v15  ;;  %v731_v27 = vmax.f32 %v705_v16, 0.0 }
 0x12b   : > { %v730_v25 = vmax.f32 %v700_v21, 0.0  ;;  %v2608_v26 = vpop.f32.mrb[14].mxu0  ;;  %3120 = vmatpush3.bf16.msra.mxu1 %v3117_v6  ;;  %v3177_v6 = vpack.c.bf16 %v1545_v62, %v1544_v61  ;;  %v1935_v61 = vld [vmem:[%s4354_s13 + $0x30] sm:$0xff]  ;;  %v1936_v62 = vld [vmem:[%s4354_s13 + $0x38] sm:$0xff] }
 0x12c   : > { %v715_v33 = vadd.f32 %v2608_v26, %v4015_v11  ;;  %v709_v36 = vpop.f32.mrb[15].mxu0  ;;  %3122 = vmatprep.subr.bf16.mxu1 %v3121_v20 }
 0x12d   : > { %v710_v44 = vadd.f32 %v4015_v11, %v709_v36  ;;  %2659 = vmatprep.mubr.f32.mxu1 %v730_v25 }
 0x12e   : > { %2660 = vmatmul.mubr.f32.gmra.mrb[12].mxu1 %v731_v27  ;;  %v733_v4 = vmax.f32 %v715_v33, 0.0 }
 0x12f   : > { %v732_v60 = vmax.f32 %v710_v44, 0.0  ;;  %v2699_v3 = vpop.f32.mrb[16].mxu0  ;;  %3124 = vmatpush3.bf16.msra.mxu1 %v3121_v20  ;;  %v3181_v20 = vpack.c.bf16 %v1547_v9, %v1546_v8  ;;  %v1937_v8 = vld [vmem:[%s4354_s13 + $0x40] sm:$0xff]  ;;  %v1938_v9 = vld [vmem:[%s4354_s13 + $0x48] sm:$0xff] }
 0x130   : > { %v1038_v11 = vadd.f32 %v2699_v3, %v4078_v51  ;;  %v1032_v12 = vpop.f32.mrb[17].mxu0  ;;  %3126 = vmatprep.subr.bf16.mxu1 %v3125_v43 }
 0x131   : > { %v1033_v18 = vadd.f32 %v4078_v51, %v1032_v12  ;;  %2662 = vmatprep.mubr.f32.mxu1 %v732_v60 }
 0x132   : > { %2663 = vmatmul.mubr.f32.gmra.mrb[14].mxu1 %v733_v4  ;;  %v1112_v30 = vmax.f32 %v1038_v11, 0.0 }
 0x133   : > { %v1111_v28 = vmax.f32 %v1033_v18, 0.0  ;;  %v2702_v29 = vpop.f32.mrb[18].mxu0  ;;  %3128 = vmatpush3.bf16.msra.mxu1 %v3125_v43  ;;  %v3185_v43 = vpack.c.bf16 %v1549_v24, %v1548_v22  ;;  %v1939_v22 = vld [vmem:[%s4354_s13 + $0x50] sm:$0xff]  ;;  %v1940_v24 = vld [vmem:[%s4354_s13 + $0x58] sm:$0xff] }
 0x134   : > { %v1048_v31 = vadd.f32 %v2702_v29, %v4078_v51  ;;  %v1042_v32 = vpop.f32.mrb[19].mxu0  ;;  %3162 = vmatprep.subr.bf16.mxu1 %v3161_v13 }
 0x135   : > { %v1043_v35 = vadd.f32 %v4078_v51, %v1042_v32  ;;  %2753 = vmatprep.mubr.f32.mxu1 %v1111_v28  ;;  %v1930_v28 = vld [vmem:[%s4354_s13 + $0x8] sm:$0xff] }
 0x136   : > { %2754 = vmatmul.mubr.f32.vlgmr.msra.gmra.mrb[0].mxu1 %v1112_v30  ;;  %v1114_v41 = vmax.f32 %v1048_v31, 0.0 }
 0x137   : > { %v1113_v39 = vmax.f32 %v1043_v35, 0.0  ;;  %v2705_v40 = vpop.f32.mrb[20].mxu0  ;;  %3164 = vmatpush3.bf16.msra.mxu1 %v3161_v13  ;;  %v3189_v13 = vpack.c.bf16 %v1551_v59, %v1550_v52  ;;  %v1941_v52 = vld [vmem:[%s4354_s13 + $0x60] sm:$0xff]  ;;  %v1942_v59 = vld [vmem:[%s4354_s13 + $0x68] sm:$0xff] }
 0x138   : > { %v1058_v42 = vadd.f32 %v2705_v40, %v4078_v51  ;;  %v1052_v45 = vpop.f32.mrb[21].mxu0  ;;  %3166 = vmatprep.subr.bf16.mxu1 %v3165_v34 }
 0x139   : > { %v1053_v47 = vadd.f32 %v4078_v51, %v1052_v45  ;;  %2756 = vmatprep.mubr.f32.mxu1 %v1113_v39 }
 0x13a   : > { %2757 = vmatmul.mubr.f32.gmra.mrb[2].mxu1 %v1114_v41  ;;  %v1116_v54 = vmax.f32 %v1058_v42, 0.0 }
 0x13b   : > { %v1115_v50 = vmax.f32 %v1053_v47, 0.0  ;;  %v2708_v53 = vpop.f32.mrb[22].mxu0  ;;  %3168 = vmatpush3.bf16.msra.mxu1 %v3165_v34  ;;  %v3225_v34 = vpack.c.bf16 %v1930_v28, %v1929_v23  ;;  %v1943_v23 = vld [vmem:[%s4354_s13 + $0x70] sm:$0xff]  ;;  %v1944_v28 = vld [vmem:[%s4354_s13 + $0x78] sm:$0xff] }
 0x13c   : > { %v1068_v55 = vadd.f32 %v2708_v53, %v4078_v51  ;;  %v1062_v56 = vpop.f32.mrb[23].mxu0  ;;  %3170 = vmatprep.subr.bf16.mxu1 %v3169_v46 }
 0x13d   : > { %v1063_v58 = vadd.f32 %v4078_v51, %v1062_v56  ;;  %2759 = vmatprep.mubr.f32.mxu1 %v1115_v50 }
 0x13e   : > { %2760 = vmatmul.mubr.f32.gmra.mrb[4].mxu1 %v1116_v54  ;;  %v1118_v1 = vmax.f32 %v1068_v55, 0.0 }
 0x13f   : > { %v1117_v63 = vmax.f32 %v1063_v58, 0.0  ;;  %v2711_v0 = vpop.f32.mrb[24].mxu0  ;;  %3172 = vmatpush3.bf16.msra.mxu1 %v3169_v46  ;;  %v3229_v46 = vpack.c.bf16 %v1932_v38, %v1931_v37  ;;  %v4216_v37 = vld [vmem:[%s4350_s9] ss:$0 sm:$0xff] }
 0x140   : > { %v1078_v2 = vadd.f32 %v2711_v0, %v4078_v51  ;;  %v1072_v5 = vpop.f32.mrb[25].mxu0  ;;  %3174 = vmatprep.subr.bf16.mxu1 %v3173_v57 }
 0x141   : > { %v1073_v7 = vadd.f32 %v4078_v51, %v1072_v5  ;;  %2762 = vmatprep.mubr.f32.mxu1 %v1117_v63 }
 0x142   : > { %2763 = vmatmul.mubr.f32.gmra.mrb[6].mxu1 %v1118_v1  ;;  %v1120_v15 = vmax.f32 %v1078_v2, 0.0 }
 0x143   : > { %v1119_v10 = vmax.f32 %v1073_v7, 0.0  ;;  %v2714_v14 = vpop.f32.mrb[26].mxu0  ;;  %3176 = vmatpush3.bf16.msra.mxu1 %v3173_v57  ;;  %v3233_v57 = vpack.c.bf16 %v1934_v49, %v1933_v48 }
 0x144   : > { %v1088_v16 = vadd.f32 %v2714_v14, %v4078_v51  ;;  %v1082_v17 = vpop.f32.mrb[27].mxu0  ;;  %3178 = vmatprep.subr.bf16.mxu1 %v3177_v6 }
 0x145   : > { %v1083_v21 = vadd.f32 %v4078_v51, %v1082_v17  ;;  %2765 = vmatprep.mubr.f32.mxu1 %v1119_v10 }
 0x146   : > { %2766 = vmatmul.mubr.f32.gmra.mrb[8].mxu1 %v1120_v15  ;;  %v1122_v27 = vmax.f32 %v1088_v16, 0.0 }
 0x147   : > { %v1121_v25 = vmax.f32 %v1083_v21, 0.0  ;;  %v2717_v26 = vpop.f32.mrb[28].mxu0  ;;  %3180 = vmatpush3.bf16.msra.mxu1 %v3177_v6  ;;  %v3237_v6 = vpack.c.bf16 %v1936_v62, %v1935_v61 }
 0x148   : > { %v1098_v33 = vadd.f32 %v2717_v26, %v4078_v51  ;;  %v1092_v36 = vpop.f32.mrb[29].mxu0  ;;  %3182 = vmatprep.subr.bf16.mxu1 %v3181_v20 }
 0x149   : > { %v1093_v44 = vadd.f32 %v4078_v51, %v1092_v36  ;;  %2768 = vmatprep.mubr.f32.mxu1 %v1121_v25 }
 0x14a   : > { %2769 = vmatmul.mubr.f32.gmra.mrb[10].mxu1 %v1122_v27  ;;  %v1124_v4 = vmax.f32 %v1098_v33, 0.0 }
 0x14b   : > { %v1123_v60 = vmax.f32 %v1093_v44, 0.0  ;;  %v2720_v3 = vpop.f32.mrb[30].mxu0  ;;  %3184 = vmatpush3.bf16.msra.mxu1 %v3181_v20  ;;  %v3241_v20 = vpack.c.bf16 %v1938_v9, %v1937_v8 }
 0x14c   : > { %v1108_v11 = vadd.f32 %v2720_v3, %v4078_v51  ;;  %v1102_v12 = vpop.f32.mrb[31].mxu0  ;;  %3186 = vmatprep.subr.bf16.mxu1 %v3185_v43 }
 0x14d   : > { %v1103_v18 = vadd.f32 %v4078_v51, %v1102_v12  ;;  %2771 = vmatprep.mubr.f32.mxu1 %v1123_v60 }
 0x14e   : > { %2772 = vmatmul.mubr.f32.gmra.mrb[12].mxu1 %v1124_v4  ;;  %v1126_v31 = vmax.f32 %v1108_v11, 0.0 }
 0x14f   : > { %v1125_v29 = vmax.f32 %v1103_v18, 0.0  ;;  %v2811_v30 = vpop.f32.mrb[32].mxu0  ;;  %3188 = vmatpush3.bf16.msra.mxu1 %v3185_v43  ;;  %v3245_v43 = vpack.c.bf16 %v1940_v24, %v1939_v22 }
 0x150   : > { %v1431_v51 = vadd.f32 %v2811_v30, %v4147_v19  ;;  %v1425_v32 = vpop.f32.mrb[33].mxu0  ;;  %3190 = vmatprep.subr.bf16.mxu1 %v3189_v13 }
 0x151   : > { %v1426_v35 = vadd.f32 %v4147_v19, %v1425_v32  ;;  %2774 = vmatprep.mubr.f32.mxu1 %v1125_v29 }
 0x152   : > { %2775 = vmatmul.mubr.f32.gmra.mrb[14].mxu1 %v1126_v31  ;;  %v1505_v41 = vmax.f32 %v1431_v51, 0.0 }
 0x153   : > { %v1504_v39 = vmax.f32 %v1426_v35, 0.0  ;;  %v2814_v40 = vpop.f32.mrb[34].mxu0  ;;  %3192 = vmatpush3.bf16.msra.mxu1 %v3189_v13  ;;  %v3249_v13 = vpack.c.bf16 %v1942_v59, %v1941_v52 }
 0x154   : > { %v1441_v42 = vadd.f32 %v2814_v40, %v4147_v19  ;;  %v1435_v45 = vpop.f32.mrb[35].mxu0  ;;  %3226 = vmatprep.subr.bf16.mxu1 %v3225_v34 }
 0x155   : > { %v1436_v47 = vadd.f32 %v4147_v19, %v1435_v45  ;;  %2865 = vmatprep.mubr.f32.mxu1 %v1504_v39 }
 0x156   : > { %2866 = vmatmul.mubr.f32.vlgmr.msra.gmra.mrb[0].mxu1 %v1505_v41  ;;  %v1507_v54 = vmax.f32 %v1441_v42, 0.0 }
 0x157   : > { %v1506_v50 = vmax.f32 %v1436_v47, 0.0  ;;  %v2817_v53 = vpop.f32.mrb[36].mxu0  ;;  %3228 = vmatpush3.bf16.msra.mxu1 %v3225_v34  ;;  %v3253_v34 = vpack.c.bf16 %v1944_v28, %v1943_v23 }
 0x158   : > { %v1451_v55 = vadd.f32 %v2817_v53, %v4147_v19  ;;  %v1445_v56 = vpop.f32.mrb[37].mxu0  ;;  %3230 = vmatprep.subr.bf16.mxu1 %v3229_v46 }
 0x159   : > { %v1446_v58 = vadd.f32 %v4147_v19, %v1445_v56  ;;  %2868 = vmatprep.mubr.f32.mxu1 %v1506_v50 }
 0x15a   : > { %2869 = vmatmul.mubr.f32.gmra.mrb[2].mxu1 %v1507_v54  ;;  %v1509_v1 = vmax.f32 %v1451_v55, 0.0 }
 0x15b   : > { %v1508_v63 = vmax.f32 %v1446_v58, 0.0  ;;  %v2820_v0 = vpop.f32.mrb[38].mxu0  ;;  %3232 = vmatpush3.bf16.msra.mxu1 %v3229_v46 }
 0x15c   : > { %v1461_v2 = vadd.f32 %v2820_v0, %v4147_v19  ;;  %v1455_v5 = vpop.f32.mrb[39].mxu0  ;;  %3234 = vmatprep.subr.bf16.mxu1 %v3233_v57 }
 0x15d   : > { %v1456_v7 = vadd.f32 %v4147_v19, %v1455_v5  ;;  %2871 = vmatprep.mubr.f32.mxu1 %v1508_v63 }
 0x15e   : > { %2872 = vmatmul.mubr.f32.gmra.mrb[4].mxu1 %v1509_v1  ;;  %v1511_v15 = vmax.f32 %v1461_v2, 0.0 }
 0x15f   : > { %v1510_v10 = vmax.f32 %v1456_v7, 0.0  ;;  %v2823_v14 = vpop.f32.mrb[40].mxu0  ;;  %3236 = vmatpush3.bf16.msra.mxu1 %v3233_v57 }
 0x160   : > { %v1471_v16 = vadd.f32 %v2823_v14, %v4147_v19  ;;  %v1465_v17 = vpop.f32.mrb[41].mxu0  ;;  %3238 = vmatprep.subr.bf16.mxu1 %v3237_v6 }
 0x161   : > { %v1466_v21 = vadd.f32 %v4147_v19, %v1465_v17  ;;  %2874 = vmatprep.mubr.f32.mxu1 %v1510_v10 }
 0x162   : > { %2875 = vmatmul.mubr.f32.gmra.mrb[6].mxu1 %v1511_v15  ;;  %v1513_v27 = vmax.f32 %v1471_v16, 0.0 }
 0x163   : > { %v1512_v25 = vmax.f32 %v1466_v21, 0.0  ;;  %v2826_v26 = vpop.f32.mrb[42].mxu0  ;;  %3240 = vmatpush3.bf16.msra.mxu1 %v3237_v6 }
 0x164   : > { %v1481_v33 = vadd.f32 %v2826_v26, %v4147_v19  ;;  %v1475_v36 = vpop.f32.mrb[43].mxu0  ;;  %3242 = vmatprep.subr.bf16.mxu1 %v3241_v20 }
 0x165   : > { %v1476_v44 = vadd.f32 %v4147_v19, %v1475_v36  ;;  %2877 = vmatprep.mubr.f32.mxu1 %v1512_v25 }
 0x166   : > { %2878 = vmatmul.mubr.f32.gmra.mrb[8].mxu1 %v1513_v27  ;;  %v1515_v4 = vmax.f32 %v1481_v33, 0.0 }
 0x167   : > { %v1514_v60 = vmax.f32 %v1476_v44, 0.0  ;;  %v2829_v3 = vpop.f32.mrb[44].mxu0  ;;  %3244 = vmatpush3.bf16.msra.mxu1 %v3241_v20 }
 0x168   : > { %v1491_v11 = vadd.f32 %v2829_v3, %v4147_v19  ;;  %v1485_v12 = vpop.f32.mrb[45].mxu0  ;;  %3246 = vmatprep.subr.bf16.mxu1 %v3245_v43 }
 0x169   : > { %v1486_v18 = vadd.f32 %v4147_v19, %v1485_v12  ;;  %2880 = vmatprep.mubr.f32.mxu1 %v1514_v60 }
 0x16a   : > { %2881 = vmatmul.mubr.f32.gmra.mrb[10].mxu1 %v1515_v4  ;;  %v1517_v31 = vmax.f32 %v1491_v11, 0.0  ;;  %v4239_v11 = vld [vmem:[%s509_s23] ss:$0 sm:$0xff]  ;;  %s3394_s23 = scalar_lea.vmem %s4283_s24, 2048 }
 0x16b   : > { %v1516_v29 = vmax.f32 %v1486_v18, 0.0  ;;  %v2832_v30 = vpop.f32.mrb[46].mxu0  ;;  %3248 = vmatpush3.bf16.msra.mxu1 %v3245_v43  ;;  %p3395_p0 = scmp.ne.s32.totalorder %s4283_s24, %s3394_s23  ;;  %p3402_p5 = scmp.lt.s32.totalorder %s3400_s26, %s3394_s23 }
 0x16c   : > { %v1501_v51 = vadd.f32 %v2832_v30, %v4147_v19  ;;  %v1495_v32 = vpop.f32.mrb[47].mxu0  ;;  %3250 = vmatprep.subr.bf16.mxu1 %v3249_v13 }
 0x16d   : > { %v1496_v35 = vadd.f32 %v4147_v19, %v1495_v32  ;;  %2883 = vmatprep.mubr.f32.mxu1 %v1516_v29  ;;  %p3396_p1 = pnand %p3395_p0, %p3619_p3  ;;  %p3403_p6 = por %p3402_p5, %p3401_p4 }
 0x16e   : > { %2884 = vmatmul.mubr.f32.gmra.mrb[12].mxu1 %v1517_v31  ;;  %v1519_v40 = vmax.f32 %v1501_v51, 0.0 }
 0x16f   : > { %v1518_v38 = vmax.f32 %v1496_v35, 0.0  ;;  %v2923_v39 = vpop.f32.mrb[48].mxu0  ;;  %3252 = vmatpush3.bf16.msra.mxu1 %v3249_v13  ;;  %p3397_p2 = pneg %p3396_p1 }
 0x170   : > { %v1824_v41 = vadd.f32 %v2923_v39, %v4216_v37  ;;  %v1818_v42 = vpop.f32.mrb[49].mxu0  ;;  %3254 = vmatprep.subr.bf16.mxu1 %v3253_v34 }
 0x171   : > { %v1819_v45 = vadd.f32 %v4216_v37, %v1818_v42  ;;  %2886 = vmatprep.mubr.f32.mxu1 %v1518_v38  ;;  %p3404_p7 = pnand %p3403_p6, %p3397_p2 }
 0x172   : > { %2887 = vmatmul.mubr.f32.gmra.mrb[14].mxu1 %v1519_v40  ;;  %v1898_v47 = vmax.f32 %v1824_v41, 0.0 }
 0x173   : > { %v1897_v19 = vmax.f32 %v1819_v45, 0.0  ;;  %v2926_v46 = vpop.f32.mrb[50].mxu0  ;;  %3256 = vmatpush3.bf16.msra.mxu1 %v3253_v34 }
 0x174   : > { %v1834_v48 = vadd.f32 %v2926_v46, %v4216_v37  ;;  %v1828_v49 = vpop.f32.mrb[51].mxu0 }
 0x175   : > { %v1829_v50 = vadd.f32 %v4216_v37, %v1828_v49  ;;  %2977 = vmatprep.mubr.f32.mxu1 %v1897_v19 }
 0x176   : > { %2978 = vmatmul.mubr.f32.vlgmr.msra.gmra.mrb[0].mxu1 %v1898_v47  ;;  %v1900_v55 = vmax.f32 %v1834_v48, 0.0 }
 0x177   : > { %v1899_v53 = vmax.f32 %v1829_v50, 0.0  ;;  %v2929_v54 = vpop.f32.mrb[52].mxu0 }
 0x178   : > { %v1844_v56 = vadd.f32 %v2929_v54, %v4216_v37  ;;  %v1838_v57 = vpop.f32.mrb[53].mxu0 }
 0x179   : > { %v1839_v58 = vadd.f32 %v4216_v37, %v1838_v57  ;;  %2980 = vmatprep.mubr.f32.mxu1 %v1899_v53 }
 0x17a   : > { %2981 = vmatmul.mubr.f32.gmra.mrb[2].mxu1 %v1900_v55  ;;  %v1902_v63 = vmax.f32 %v1844_v56, 0.0 }
 0x17b   : > { %v1901_v61 = vmax.f32 %v1839_v58, 0.0  ;;  %v2932_v62 = vpop.f32.mrb[54].mxu0 }
 0x17c   : > { %v1854_v0 = vadd.f32 %v2932_v62, %v4216_v37  ;;  %v1848_v1 = vpop.f32.mrb[55].mxu0 }
 0x17d   : > { %v1849_v2 = vadd.f32 %v4216_v37, %v1848_v1  ;;  %2983 = vmatprep.mubr.f32.mxu1 %v1901_v61 }
 0x17e   : > { %2984 = vmatmul.mubr.f32.gmra.mrb[4].mxu1 %v1902_v63  ;;  %v1904_v7 = vmax.f32 %v1854_v0, 0.0 }
 0x17f   : > { %v1903_v5 = vmax.f32 %v1849_v2, 0.0  ;;  %v2935_v6 = vpop.f32.mrb[56].mxu0 }
 0x180   : > { %v1864_v8 = vadd.f32 %v2935_v6, %v4216_v37  ;;  %v1858_v9 = vpop.f32.mrb[57].mxu0 }
 0x181   : > { %v1859_v10 = vadd.f32 %v4216_v37, %v1858_v9  ;;  %2986 = vmatprep.mubr.f32.mxu1 %v1903_v5 }
 0x182   : > { %2987 = vmatmul.mubr.f32.gmra.mrb[6].mxu1 %v1904_v7  ;;  %v1906_v16 = vmax.f32 %v1864_v8, 0.0 }
 0x183   : > { %v1905_v14 = vmax.f32 %v1859_v10, 0.0  ;;  %v2938_v15 = vpop.f32.mrb[58].mxu0 }
 0x184   : > { %v1874_v17 = vadd.f32 %v2938_v15, %v4216_v37  ;;  %v1868_v20 = vpop.f32.mrb[59].mxu0 }
 0x185   : > { %v1869_v21 = vadd.f32 %v4216_v37, %v1868_v20  ;;  %2989 = vmatprep.mubr.f32.mxu1 %v1905_v14 }
 0x186   : > { %2990 = vmatmul.mubr.f32.gmra.mrb[8].mxu1 %v1906_v16  ;;  %v1908_v25 = vmax.f32 %v1874_v17, 0.0 }
 0x187   : > { %v1907_v22 = vmax.f32 %v1869_v21, 0.0  ;;  %v2941_v24 = vpop.f32.mrb[60].mxu0 }
 0x188   : > { %v1884_v26 = vadd.f32 %v2941_v24, %v4216_v37  ;;  %v1878_v27 = vpop.f32.mrb[61].mxu0 }
 0x189   : > { %v1879_v33 = vadd.f32 %v4216_v37, %v1878_v27  ;;  %2992 = vmatprep.mubr.f32.mxu1 %v1907_v22 }
 0x18a   : > { %2993 = vmatmul.mubr.f32.gmra.mrb[10].mxu1 %v1908_v25  ;;  %v1910_v44 = vmax.f32 %v1884_v26, 0.0 }
 0x18b   : > { %v1909_v36 = vmax.f32 %v1879_v33, 0.0  ;;  %v2944_v43 = vpop.f32.mrb[62].mxu0 }
 0x18c   : > { %v1894_v52 = vadd.f32 %v2944_v43, %v4216_v37  ;;  %v1888_v59 = vpop.f32.mrb[63].mxu0 }
 0x18d   : > { %v1889_v60 = vadd.f32 %v4216_v37, %v1888_v59  ;;  %2995 = vmatprep.mubr.f32.mxu1 %v1909_v36 }
 0x18e   : > { %2996 = vmatmul.mubr.f32.gmra.mrb[12].mxu1 %v1910_v44  ;;  %v1912_v4 = vmax.f32 %v1894_v52, 0.0 }
 0x18f   : > { %v1911_v3 = vmax.f32 %v1889_v60, 0.0 }
 0x191   : > { %2998 = vmatprep.mubr.f32.mxu1 %v1911_v3 }
 0x192   : > { %2999 = vmatmul.mubr.f32.gmra.mrb[14].mxu1 %v1912_v4 }
 0x249   : > { %v2979_v12 = vpop.f32.mrb[0].mxu1 }
 0x24a   : > { %v3257_v13 = vadd.f32 %v2979_v12, %v4239_v11  ;;  %v2011_v18 = vpop.f32.mrb[1].mxu1 }
 0x24b   : > { %v3258_v23 = vadd.f32 %v4239_v11, %v2011_v18 }
 0x24c   : > { %v2139_v28 = vmax.f32 %v3257_v13, 0.0 }
 0x24d   : > { %v2138_v29 = vmax.f32 %v3258_v23, 0.0  ;;  %v2982_v30 = vpop.f32.mrb[2].mxu1 }
 0x24e   : > { %2155 = vst [vmem:[%s4245_s28 + $0x8] sm:$0xff] %v2139_v28  ;;  %v3259_v31 = vadd.f32 %v2982_v30, %v4239_v11  ;;  %v2021_v51 = vpop.f32.mrb[3].mxu1 }
 0x24f   : > { %2154 = vst [vmem:[%s4245_s28] sm:$0xff] %v2138_v29  ;;  %v3260_v32 = vadd.f32 %v4239_v11, %v2021_v51 }
 0x250   : > { %v2141_v34 = vmax.f32 %v3259_v31, 0.0 }
 0x251   : > { %v2140_v35 = vmax.f32 %v3260_v32, 0.0  ;;  %v2985_v37 = vpop.f32.mrb[4].mxu1 }
 0x252   : > { %2157 = vst [vmem:[%s4245_s28 + $0x18] sm:$0xff] %v2141_v34  ;;  %v3261_v38 = vadd.f32 %v2985_v37, %v4239_v11  ;;  %v2031_v39 = vpop.f32.mrb[5].mxu1 }
 0x253   : > { %2156 = vst [vmem:[%s4245_s28 + $0x10] sm:$0xff] %v2140_v35  ;;  %v3262_v40 = vadd.f32 %v4239_v11, %v2031_v39 }
 0x254   : > { %v2143_v41 = vmax.f32 %v3261_v38, 0.0 }
 0x255   : > { %v2142_v42 = vmax.f32 %v3262_v40, 0.0  ;;  %v2988_v45 = vpop.f32.mrb[6].mxu1 }
 0x256   : > { %2159 = vst [vmem:[%s4245_s28 + $0x28] sm:$0xff] %v2143_v41  ;;  %v3263_v19 = vadd.f32 %v2988_v45, %v4239_v11  ;;  %v2041_v46 = vpop.f32.mrb[7].mxu1 }
 0x257   : > { %2158 = vst [vmem:[%s4245_s28 + $0x20] sm:$0xff] %v2142_v42  ;;  %v3264_v47 = vadd.f32 %v4239_v11, %v2041_v46 }
 0x258   : > { %v2145_v48 = vmax.f32 %v3263_v19, 0.0 }
 0x259   : > { %v2144_v49 = vmax.f32 %v3264_v47, 0.0  ;;  %v2991_v50 = vpop.f32.mrb[8].mxu1 }
 0x25a   : > { %2161 = vst [vmem:[%s4245_s28 + $0x38] sm:$0xff] %v2145_v48  ;;  %v3265_v53 = vadd.f32 %v2991_v50, %v4239_v11  ;;  %v2051_v54 = vpop.f32.mrb[9].mxu1 }
 0x25b   : > { %2160 = vst [vmem:[%s4245_s28 + $0x30] sm:$0xff] %v2144_v49  ;;  %v3266_v55 = vadd.f32 %v4239_v11, %v2051_v54 }
 0x25c   : > { %v2147_v56 = vmax.f32 %v3265_v53, 0.0 }
 0x25d   : > { %v2146_v57 = vmax.f32 %v3266_v55, 0.0  ;;  %v2994_v58 = vpop.f32.mrb[10].mxu1 }
 0x25e   : > { %2163 = vst [vmem:[%s4245_s28 + $0x48] sm:$0xff] %v2147_v56  ;;  %v3267_v61 = vadd.f32 %v2994_v58, %v4239_v11  ;;  %v2061_v62 = vpop.f32.mrb[11].mxu1 }
 0x25f   : > { %2162 = vst [vmem:[%s4245_s28 + $0x40] sm:$0xff] %v2146_v57  ;;  %v3268_v63 = vadd.f32 %v4239_v11, %v2061_v62 }
 0x260   : > { %v2149_v0 = vmax.f32 %v3267_v61, 0.0 }
 0x261   : > { %v2148_v1 = vmax.f32 %v3268_v63, 0.0  ;;  %v2997_v2 = vpop.f32.mrb[12].mxu1 }
 0x262   : > { %2165 = vst [vmem:[%s4245_s28 + $0x58] sm:$0xff] %v2149_v0  ;;  %v3269_v5 = vadd.f32 %v2997_v2, %v4239_v11  ;;  %v2071_v6 = vpop.f32.mrb[13].mxu1 }
 0x263   : > { %2164 = vst [vmem:[%s4245_s28 + $0x50] sm:$0xff] %v2148_v1  ;;  %v3270_v7 = vadd.f32 %v4239_v11, %v2071_v6 }
 0x264   : > { %v2151_v8 = vmax.f32 %v3269_v5, 0.0 }
 0x265   : > { %v2150_v9 = vmax.f32 %v3270_v7, 0.0  ;;  %v3000_v10 = vpop.f32.mrb[14].mxu1 }
 0x266   : > { %2167 = vst [vmem:[%s4245_s28 + $0x68] sm:$0xff] %v2151_v8  ;;  %v3271_v14 = vadd.f32 %v3000_v10, %v4239_v11  ;;  %v2081_v15 = vpop.f32.mrb[15].mxu1 }
 0x267   : > { %2166 = vst [vmem:[%s4245_s28 + $0x60] sm:$0xff] %v2150_v9  ;;  %v3272_v16 = vadd.f32 %v4239_v11, %v2081_v15 }
 0x268   : > { %v2153_v17 = vmax.f32 %v3271_v14, 0.0 }
 0x269   : > { %v2152_v20 = vmax.f32 %v3272_v16, 0.0 }
 0x26a   : > { %2169 = vst [vmem:[%s4245_s28 + $0x78] sm:$0xff] %v2153_v17 }
 0x26b   : > { %2168 = vst [vmem:[%s4245_s28 + $0x70] sm:$0xff] %v2152_v20 }
 0x26c   : > { %3407 = shalt.err (!%p3404_p7)
}
 0x26d   : > { %s3408_s22 = scalar_lea.hbm %s4279_s29, 2048  ;;  %s3412_s25 = scalar_lea.hbm %s4377_s14, 8192 }
 0x26e   : > { %p3409_p9 = scmp.ne.s32.totalorder %s4279_s29, %s3408_s22  ;;  %p3413_p12 = scmp.lt.u32.totalorder %s4279_s29, %s4377_s14 }
 0x26f   : > { %p3414_p13 = scmp.lt.u32.totalorder %s3412_s25, %s3408_s22  ;;  %p3416_p1 = scmp.lt.u32.totalorder %s3408_s22, %s4279_s29 }
 0x270   : > { %p3410_p10 = pnand %p3409_p9, %p3619_p3 }
 0x271   : > { %p3415_p0 = por %p3414_p13, %p3413_p12 }
 0x272   : > { %p3411_p11 = pneg %p3410_p10 }
 0x273   : > { %p3417_p2 = por %p3416_p1, %p3415_p0 }
 0x275   : > { %p3418_p4 = pnand %p3417_p2, %p3411_p11 }
 0x277   : > { %3421 = shalt.err (!%p3418_p4)
}
 0x278   : > { %s3491_s23 = smov 128   ;;  %s3492_s16 = smov 8  }
 0x279   : > { %3321 = dma.vmem_to_hbm [thread:$0]  (%p3619_p3), %s4283_s24, 2048, %s4279_s29, %s4289_s19, %s3491_s23, %s3491_s23, %s3492_s16  }
 0x27a PF: > { %s4378_s26 = sld [smem:[#allocation6_spill]]  ;;  %p3327_p5 = scmp.ge.s32.totalorder %s3488_s20, 2 }
 0x27c   : > { %p3324_p6 = pnand %p3327_p5, %p3628_p8 }
 0x280   : > { %s2201_s17 = sand.u32 1, %s4378_s26  }
 0x281   : > { %s2202_s22 = scalar_lea.sflag [#allocation4], %s2201_s17 }
 0x282   : > { %3455 = dma.done.wait (!%p3324_p6), %s2202_s22, 2048  }
 0x283   : > { %3457 = vsyncadd (!%p3324_p6), %s2202_s22, 4294965248  ;;  %s27_s20 = sadd.s32 1, %s3488_s20   ;;  %s4380_s25 = sld [smem:[#allocation13_spill]] }
 0x284   : > { %p24_p7 = scmp.ge.s32.totalorder %s27_s20, 6   ;;  %s4381_s16 = sld [smem:[#allocation7_spill]] }
 0x285   : > { %s4382_s17 = sld [smem:[#allocation8_spill]]  ;;  %s4383_s18 = sld [smem:[#allocation9_spill]] }
 0x286   : > { %s4384_s19 = sld [smem:[#allocation11_spill]]  ;;  %s4385_s29 = smov %s3464_s30 }
 0x287   : > { %s4386_s30 = smov %s3468_s15  ;;  %26 = sbr.rel (!%p24_p7) target bundleno = 7 (0x7), region = 114 }
 0x289   : > { %s4387_s15 = smov %s4380_s25 }
 0x28e   :  { %2207 = vsyncpa [#allocation4], 1 }
 0x28f   :  { %2209 = vsyncpa [#allocation4 + $0x1], 1 }

</bundles_post_ra>
